<compile_context>
chip_gen: v6e
topology: v6e:2x2x1
jax: 0.10.0
libtpu: 0.0.40
codegen_flags: <defaults>
</compile_context>

<pallas_src>
import functools

import jax
import jax.numpy as jnp
from jax.experimental import pallas as pl
from jax.experimental.pallas import tpu as pltpu

_VMEM_LIMIT = 32 * 1024 * 1024


# ----------------------------------------------------------------------------
# helpers
# ----------------------------------------------------------------------------
def _cdiv(a, b):
    return -(-a // b)


def _round_up(x, m):
    return _cdiv(x, m) * m


def _choose_tm(m, work_per_row):
    """Row tile: multiple of 8, >=2 tiles when possible (v7x megacore)."""
    if m <= 8:
        return m
    target = 256 if work_per_row >= 32 * 1024 else 1024
    tiles = max(2, _cdiv(m, target))
    tm = _round_up(_cdiv(m, tiles), 8)
    return min(tm, _round_up(m, 8))


# ----------------------------------------------------------------------------
# Pallas matmul kernel: bf16 operands, f32 accumulate, fused BN (+ReLU)
# ----------------------------------------------------------------------------
def _mm_kernel(a_ref, b_ref, s_ref, t_ref, o_ref, *, relu):
    y = jnp.dot(a_ref[...], b_ref[...], preferred_element_type=jnp.float32)
    y = y * s_ref[...] + t_ref[...]
    if relu:
        y = jnp.maximum(y, 0.0)
    o_ref[...] = y.astype(o_ref.dtype)


def _matmul_bn(a, b, s, t, *, relu):
    """relu_opt((a @ b) * scale + shift).  a:(M,K) bf16, b:(K,N) bf16."""
    m, k = a.shape
    n = b.shape[1]
    tm = _choose_tm(m, k * n)
    grid = (_cdiv(m, tm),)
    return pl.pallas_call(
        functools.partial(_mm_kernel, relu=relu),
        out_shape=jax.ShapeDtypeStruct((m, n), jnp.bfloat16),
        grid=grid,
        in_specs=[
            pl.BlockSpec((tm, k), lambda i: (i, 0)),
            pl.BlockSpec((k, n), lambda i: (0, 0)),     # weight resident
            pl.BlockSpec((1, n), lambda i: (0, 0)),
            pl.BlockSpec((1, n), lambda i: (0, 0)),
        ],
        out_specs=pl.BlockSpec((tm, n), lambda i: (i, 0)),
        compiler_params=pltpu.CompilerParams(
            dimension_semantics=("parallel",),
            vmem_limit_bytes=_VMEM_LIMIT),
        cost_estimate=pl.CostEstimate(
            flops=2 * m * n * k, transcendentals=0,
            bytes_accessed=2 * (m * k + k * n + m * n)),
    )(a.astype(jnp.bfloat16), b, s, t)


# ----------------------------------------------------------------------------
# Fused tap-loop conv: stride-1 kxk conv without an im2col patch tensor.
# The padded NHWC input (batch 1) is flattened to (rows, cin) and kept
# resident in VMEM; each grid step accumulates kh*kw shifted 1x1 matmuls.
# ----------------------------------------------------------------------------
def _tap_kernel(x_ref, w_ref, s_ref, t_ref, o_ref, *, tm, span, offs, relu):
    start = pl.multiple_of(pl.program_id(0) * tm, tm)
    slab = x_ref[pl.ds(start, tm + span), :]          # aligned dynamic read
    cout = w_ref.shape[2]
    acc = jnp.zeros((tm, cout), jnp.float32)
    for idx, off in enumerate(offs):                  # static unrolled taps
        acc = acc + jnp.dot(slab[off:off + tm, :], w_ref[idx],
                            preferred_element_type=jnp.float32)
    y = acc * s_ref[...] + t_ref[...]
    if relu:
        y = jnp.maximum(y, 0.0)
    o_ref[...] = y.astype(o_ref.dtype)


def _tap_conv(x, w, s, t, *, kh, kw, padding, cout, relu):
    n, h, win, cin = x.shape
    ph, pw = padding
    hp, wp = h + 2 * ph, win + 2 * pw
    ho, wo = hp - kh + 1, wp - kw + 1
    mprime = ho * wp                       # over-compute along W (cols >= wo dropped)
    tm = _choose_tm(mprime, kh * kw * cin * cout)
    nmt = _cdiv(mprime, tm)
    span = _round_up((kh - 1) * wp + (kw - 1), 8)
    extra_h = _cdiv(max(0, nmt * tm + span - hp * wp), wp)
    xp = jnp.pad(x, ((0, 0), (ph, ph + extra_h), (pw, pw), (0, 0)))
    len_rows = (hp + extra_h) * wp
    xf = xp.reshape(len_rows, cin)
    offs = tuple(i * wp + j for i in range(kh) for j in range(kw))
    w_taps = w.reshape(kh * kw, cin, cout)
    out = pl.pallas_call(
        functools.partial(_tap_kernel, tm=tm, span=span, offs=offs, relu=relu),
        out_shape=jax.ShapeDtypeStruct((mprime, cout), jnp.bfloat16),
        grid=(nmt,),
        in_specs=[
            pl.BlockSpec((len_rows, cin), lambda i: (0, 0)),   # resident input
            pl.BlockSpec((kh * kw, cin, cout), lambda i: (0, 0, 0)),
            pl.BlockSpec((1, cout), lambda i: (0, 0)),
            pl.BlockSpec((1, cout), lambda i: (0, 0)),
        ],
        out_specs=pl.BlockSpec((tm, cout), lambda i: (i, 0)),
        compiler_params=pltpu.CompilerParams(
            dimension_semantics=("parallel",),
            vmem_limit_bytes=_VMEM_LIMIT),
        cost_estimate=pl.CostEstimate(
            flops=2 * mprime * cout * cin * kh * kw, transcendentals=0,
            bytes_accessed=2 * (len_rows * cin + kh * kw * cin * cout
                                + mprime * cout)),
    )(xf, w_taps, s, t)
    out = out.reshape(n, ho, wp, cout)
    if wp != wo:
        out = out[:, :, :wo, :]
    return out


# ----------------------------------------------------------------------------
# Conv + BN + ReLU dispatcher (1x1 matmul / tap-loop / im2col for stride-2)
# ----------------------------------------------------------------------------
@functools.partial(jax.jit, static_argnames=("kh", "kw", "stride", "padding",
                                              "cout", "relu", "use_tap"))
def _conv_bn_relu(x, w, s, t, *, kh, kw, stride, padding, cout, relu, use_tap):
    n, h, win, cin = x.shape
    sh, sw = stride
    ph, pw = padding
    if kh == 1 and kw == 1 and sh == 1 and sw == 1:
        out = _matmul_bn(x.reshape(n * h * win, cin), w.reshape(cin, cout),
                         s, t, relu=relu)
        return out.reshape(n, h, win, cout)
    if use_tap and sh == 1 and sw == 1 and n == 1:
        return _tap_conv(x, w, s, t, kh=kh, kw=kw, padding=(ph, pw),
                         cout=cout, relu=relu)
    # im2col fallback (only the few stride-2 convs in this network).
    xp = jnp.pad(x, ((0, 0), (ph, ph), (pw, pw), (0, 0))) if (ph or pw) else x
    hp, wp = xp.shape[1], xp.shape[2]
    ho = (hp - kh) // sh + 1
    wo = (wp - kw) // sw + 1
    cols = []
    for i in range(kh):
        for j in range(kw):
            cols.append(xp[:, i:i + (ho - 1) * sh + 1:sh,
                           j:j + (wo - 1) * sw + 1:sw, :])
    patches = jnp.concatenate(cols, axis=-1)
    out = _matmul_bn(patches.reshape(n * ho * wo, kh * kw * cin),
                     w.reshape(kh * kw * cin, cout), s, t, relu=relu)
    return out.reshape(n, ho, wo, cout)


_TAP_OK = None


def _tap_supported():
    """Probe-compile the tap-loop conv once; fall back to im2col if the
    in-VMEM shifted slicing it relies on fails to lower on this backend."""
    global _TAP_OK
    if _TAP_OK is None:
        try:
            x = jnp.zeros((1, 8, 8, 8), jnp.bfloat16)
            w = jnp.zeros((3, 3, 8, 8), jnp.bfloat16)
            s = jnp.ones((1, 8), jnp.float32)
            t = jnp.zeros((1, 8), jnp.float32)
            r = _conv_bn_relu(x, w, s, t, kh=3, kw=3, stride=(1, 1),
                              padding=(1, 1), cout=8, relu=True, use_tap=True)
            jax.block_until_ready(r)
            _TAP_OK = True
        except Exception:
            _TAP_OK = False
    return _TAP_OK


def conv_bn_relu(x, p, stride, padding, relu=True):
    return _conv_bn_relu(x, p["w"], p["scale"], p["shift"],
                         kh=p["kh"], kw=p["kw"], stride=tuple(stride),
                         padding=tuple(padding), cout=p["cout"], relu=relu,
                         use_tap=_tap_supported())


def run_seq(x, seq):
    for p, stride, pad in seq:
        x = conv_bn_relu(x, p, stride, pad)
    return x


@functools.partial(jax.jit, static_argnames=("splits",))
def _conv1x1_group_impl(x, w, s, t, *, splits):
    n, h, win, cin = x.shape
    out = _matmul_bn(x.reshape(n * h * win, cin), w, s, t, relu=True)
    out = out.reshape(n, h, win, -1)
    res, off = [], 0
    for c in splits:
        res.append(out[..., off:off + c])
        off += c
    return tuple(res)


def conv1x1_group(x, gp):
    """Several same-input 1x1 conv+BN+ReLU branches fused into one matmul."""
    return _conv1x1_group_impl(x, gp["w"], gp["scale"], gp["shift"],
                               splits=gp["splits"])


@jax.jit
def _dense(x, w, s, t):
    return _matmul_bn(x, w, s, t, relu=False)


# ----------------------------------------------------------------------------
# Pooling: single-invocation kernel, window shifts reduced in VMEM, one store
# ----------------------------------------------------------------------------
def _pool_kernel(x_ref, o_ref, *, kh, kw, op, inv_count):
    ho, wo = o_ref.shape[1], o_ref.shape[2]
    if op == "max":
        acc = x_ref[:, 0:ho, 0:wo, :]
        for i in range(kh):
            for j in range(kw):
                if i == 0 and j == 0:
                    continue
                acc = jnp.maximum(acc, x_ref[:, i:i + ho, j:j + wo, :])
        o_ref[...] = acc
    else:  # avg, count_include_pad=True (PyTorch default) -> divide by kh*kw
        acc = x_ref[:, 0:ho, 0:wo, :].astype(jnp.float32)
        for i in range(kh):
            for j in range(kw):
                if i == 0 and j == 0:
                    continue
                acc = acc + x_ref[:, i:i + ho, j:j + wo, :].astype(jnp.float32)
        o_ref[...] = (acc * inv_count).astype(o_ref.dtype)


@functools.partial(jax.jit, static_argnames=("ksize", "stride", "padding", "op"))
def _pool(x, *, ksize, stride, padding, op):
    kh, kw = ksize
    sh, sw = stride
    ph, pw = padding
    if ph or pw:
        x = jnp.pad(x, ((0, 0), (ph, ph), (pw, pw), (0, 0)))
    n, hp, wp, c = x.shape
    hof = hp - kh + 1
    wof = wp - kw + 1
    out = pl.pallas_call(
        functools.partial(_pool_kernel, kh=kh, kw=kw, op=op,
                          inv_count=1.0 / (kh * kw)),
        out_shape=jax.ShapeDtypeStruct((n, hof, wof, c), x.dtype),
        compiler_params=pltpu.CompilerParams(vmem_limit_bytes=_VMEM_LIMIT),
    )(x)
    if sh > 1 or sw > 1:
        out = out[:, ::sh, ::sw, :]
    return out


def pool(x, ksize, stride, padding, op):
    return _pool(x, ksize=tuple(ksize), stride=tuple(stride),
                 padding=tuple(padding), op=op)


# ----------------------------------------------------------------------------
# Deterministic parameter construction (synthetic, BN folded in eval mode)
# ----------------------------------------------------------------------------
class ParamGen:
    def __init__(self, seed):
        self.key = jax.random.PRNGKey(seed)
        self.n = 0

    def _next(self):
        self.n += 1
        return jax.random.fold_in(self.key, self.n)

    def cb(self, cin, cout, kh, kw):
        fan_in = kh * kw * cin
        w = jax.random.normal(self._next(), (kh, kw, cin, cout),
                              jnp.float32) * (2.0 / fan_in) ** 0.5
        eps = 1e-5
        scale = jnp.full((1, cout), 1.0 / (1.0 + eps) ** 0.5, jnp.float32)
        shift = jnp.zeros((1, cout), jnp.float32)
        return {"w": w.astype(jnp.bfloat16), "scale": scale, "shift": shift,
                "kh": kh, "kw": kw, "cin": cin, "cout": cout}

    def cb_group(self, cin, couts):
        ps = [self.cb(cin, c, 1, 1) for c in couts]
        w = jnp.concatenate([p["w"].reshape(cin, p["cout"]) for p in ps], 1)
        s = jnp.concatenate([p["scale"] for p in ps], 1)
        t = jnp.concatenate([p["shift"] for p in ps], 1)
        return {"w": w, "scale": s, "shift": t,
                "splits": tuple(int(c) for c in couts)}

    def linear(self, cin, cout):
        w = jax.random.normal(self._next(), (cin, cout),
                              jnp.float32) * (1.0 / cin) ** 0.5
        b = jax.random.normal(self._next(), (cout,), jnp.float32) * 0.01
        return {"w": w.astype(jnp.bfloat16),
                "scale": jnp.ones((1, cout), jnp.float32),
                "shift": b.reshape(1, cout).astype(jnp.float32),
                "cout": cout}


# ----------------------------------------------------------------------------
# InceptionV4 blocks
# ----------------------------------------------------------------------------
def init_stem(pg, cin):
    return dict(
        conv1=(pg.cb(cin, 32, 3, 3), (2, 2), (0, 0)),
        conv2=(pg.cb(32, 32, 3, 3), (1, 1), (0, 0)),
        conv3=(pg.cb(32, 64, 3, 3), (1, 1), (1, 1)),
        conv4=(pg.cb(64, 96, 3, 3), (2, 2), (0, 0)),
        heads=pg.cb_group(160, (64, 64)),            # branch1/branch2 1x1 heads
        b1_tail=[(pg.cb(64, 96, 3, 3), (1, 1), (0, 0))],
        b2_tail=[(pg.cb(64, 64, 7, 1), (1, 1), (3, 0)),
                 (pg.cb(64, 64, 1, 7), (1, 1), (0, 3)),
                 (pg.cb(64, 96, 3, 3), (1, 1), (0, 0))],
        conv5=[(pg.cb(192, 192, 3, 3), (2, 2), (0, 0))],
    )


def stem_forward(x, p):
    x = conv_bn_relu(x, *p["conv1"])
    x = conv_bn_relu(x, *p["conv2"])
    x = conv_bn_relu(x, *p["conv3"])
    mp1 = pool(x, (3, 3), (2, 2), (0, 0), "max")
    c4 = conv_bn_relu(x, *p["conv4"])
    x = jnp.concatenate([mp1, c4], axis=-1)
    h1, h2 = conv1x1_group(x, p["heads"])
    b1 = run_seq(h1, p["b1_tail"])
    b2 = run_seq(h2, p["b2_tail"])
    x = jnp.concatenate([b1, b2], axis=-1)
    mp2 = pool(x, (3, 3), (2, 2), (0, 0), "max")
    c5 = run_seq(x, p["conv5"])
    return jnp.concatenate([mp2, c5], axis=-1)


def init_blockA(pg, cin):
    return dict(
        heads=pg.cb_group(cin, (64, 64, 96)),        # b1 head, b2 head, b3
        b1_tail=[(pg.cb(64, 96, 3, 3), (1, 1), (1, 1)),
                 (pg.cb(96, 96, 3, 3), (1, 1), (1, 1))],
        b2_tail=[(pg.cb(64, 96, 3, 3), (1, 1), (1, 1))],
        b4=[(pg.cb(cin, 96, 1, 1), (1, 1), (0, 0))],
    )


def blockA_forward(x, p):
    h1, h2, b3 = conv1x1_group(x, p["heads"])
    b1 = run_seq(h1, p["b1_tail"])
    b2 = run_seq(h2, p["b2_tail"])
    b4 = run_seq(pool(x, (3, 3), (1, 1), (1, 1), "avg"), p["b4"])
    return jnp.concatenate([b1, b2, b3, b4], axis=-1)


def init_blockB(pg, cin):
    return dict(
        heads=pg.cb_group(cin, (192, 192, 384)),     # b1 head, b2 head, b3
        b1_tail=[(pg.cb(192, 192, 1, 7), (1, 1), (0, 3)),
                 (pg.cb(192, 224, 7, 1), (1, 1), (3, 0)),
                 (pg.cb(224, 224, 1, 7), (1, 1), (0, 3)),
                 (pg.cb(224, 256, 7, 1), (1, 1), (3, 0))],
        b2_tail=[(pg.cb(192, 224, 1, 7), (1, 1), (0, 3)),
                 (pg.cb(224, 256, 1, 7), (1, 1), (0, 3))],
        b4=[(pg.cb(cin, 128, 1, 1), (1, 1), (0, 0))],
    )


def blockB_forward(x, p):
    h1, h2, b3 = conv1x1_group(x, p["heads"])
    b1 = run_seq(h1, p["b1_tail"])
    b2 = run_seq(h2, p["b2_tail"])
    b4 = run_seq(pool(x, (3, 3), (1, 1), (1, 1), "avg"), p["b4"])
    return jnp.concatenate([b1, b2, b3, b4], axis=-1)


def init_blockC(pg, cin):
    return dict(
        heads=pg.cb_group(cin, (384, 384, 256)),     # conv1 head, conv2, b5
        conv1_tail=[(pg.cb(384, 448, 1, 3), (1, 1), (0, 1)),
                    (pg.cb(448, 512, 3, 1), (1, 1), (1, 0))],
        b1=[(pg.cb(512, 256, 1, 3), (1, 1), (0, 1))],
        b2=[(pg.cb(512, 256, 3, 1), (1, 1), (1, 0))],
        b3=[(pg.cb(384, 256, 3, 1), (1, 1), (1, 0))],
        b4=[(pg.cb(384, 256, 1, 3), (1, 1), (0, 1))],
        b6=[(pg.cb(cin, 256, 1, 1), (1, 1), (0, 0))],
    )


def blockC_forward(x, p):
    c1h, c2, b5 = conv1x1_group(x, p["heads"])
    c1 = run_seq(c1h, p["conv1_tail"])
    b1 = run_seq(c1, p["b1"])
    b2 = run_seq(c1, p["b2"])
    b3 = run_seq(c2, p["b3"])
    b4 = run_seq(c2, p["b4"])
    b6 = run_seq(pool(x, (3, 3), (1, 1), (1, 1), "avg"), p["b6"])
    return jnp.concatenate([b1, b2, b3, b4, b5, b6], axis=-1)


def init_redA(pg, cin, k, l, m, n):
    return dict(
        b1=[(pg.cb(cin, k, 1, 1), (1, 1), (0, 0)),
            (pg.cb(k, l, 3, 3), (1, 1), (1, 1)),
            (pg.cb(l, m, 3, 3), (2, 2), (0, 0))],
        b2=[(pg.cb(cin, n, 3, 3), (2, 2), (0, 0))],
    )


def redA_forward(x, p):
    b1 = run_seq(x, p["b1"])
    b2 = run_seq(x, p["b2"])
    b3 = pool(x, (3, 3), (2, 2), (0, 0), "max")
    return jnp.concatenate([b1, b2, b3], axis=-1)


def init_redB(pg, cin):
    return dict(
        heads=pg.cb_group(cin, (256, 192)),          # b1 head, b2 head
        b1_tail=[(pg.cb(256, 256, 1, 7), (1, 1), (0, 3)),
                 (pg.cb(256, 320, 7, 1), (1, 1), (3, 0)),
                 (pg.cb(320, 320, 3, 3), (2, 2), (0, 0))],
        b2_tail=[(pg.cb(192, 192, 3, 3), (2, 2), (0, 0))],
    )


def redB_forward(x, p):
    h1, h2 = conv1x1_group(x, p["heads"])
    b1 = run_seq(h1, p["b1_tail"])
    b2 = run_seq(h2, p["b2_tail"])
    b3 = pool(x, (3, 3), (2, 2), (0, 0), "max")
    return jnp.concatenate([b1, b2, b3], axis=-1)


def init_inception_v4(seed, num_classes):
    pg = ParamGen(seed)
    return dict(
        stem=init_stem(pg, 3),
        incA=[init_blockA(pg, 384) for _ in range(4)],
        redA=init_redA(pg, 384, 192, 224, 256, 384),
        incB=[init_blockB(pg, 1024) for _ in range(7)],
        redB=init_redB(pg, 1024),
        incC=[init_blockC(pg, 1536) for _ in range(3)],
        fc=pg.linear(1536, num_classes),
    )


def inception_v4_forward(x_nchw, params):
    x = jnp.transpose(x_nchw, (0, 2, 3, 1)).astype(jnp.bfloat16)  # NCHW->NHWC
    x = stem_forward(x, params["stem"])
    for p in params["incA"]:
        x = blockA_forward(x, p)
    x = redA_forward(x, params["redA"])
    for p in params["incB"]:
        x = blockB_forward(x, p)
    x = redB_forward(x, params["redB"])
    for p in params["incC"]:
        x = blockC_forward(x, p)
    x = pool(x, (8, 8), (8, 8), (0, 0), "avg")     # AvgPool2d((8,8))
    x = x.reshape(x.shape[0], -1)                  # flatten -> (N, 1536)
    # Dropout(0.2) is identity in inference mode.
    fc = params["fc"]
    logits = _dense(x, fc["w"], fc["scale"], fc["shift"])
    return logits.astype(jnp.float32)


if __name__ == "__main__":
    num_classes = 10
    # Input spatial size 299 is the smallest consistent with AvgPool2d((8,8))
    # followed by Linear(1536, num_classes); batch kept at 1 to stay small.
    x = jax.random.normal(jax.random.PRNGKey(0), (1, 3, 299, 299), jnp.float32)
    params = init_inception_v4(seed=42, num_classes=num_classes)

    logits = inception_v4_forward(x, params)
    logits = jax.block_until_ready(logits)
    assert logits.shape == (1, num_classes)
    assert bool(jnp.all(jnp.isfinite(logits)))
    print("KERNEL_OK")
</pallas_src>

<mosaic_0001>
module attributes {stable_mosaic.version = 11 : i64} {
  func.func @_tap_kernel(%arg0: i32, %arg1: memref<110x8xbf16, #tpu.memory_space<vmem>>, %arg2: memref<9x8x8xbf16, #tpu.memory_space<vmem>>, %arg3: memref<1x8xf32, #tpu.memory_space<vmem>>, %arg4: memref<1x8xf32, #tpu.memory_space<vmem>>, %arg5: memref<40x8xbf16, #tpu.memory_space<vmem>>) attributes {dimension_semantics = [#tpu.dimension_semantics<parallel>], iteration_bounds = array<i64: 2>, scalar_prefetch = 0 : i64, scratch_operands = 0 : i64, tpu.core_type = #tpu.core_type<tc>, window_params = [{pipeline_mode = #tpu.pipeline_mode<synchronous>, transform_indices = @transform_0, window_bounds = array<i64: 110, 8>}, {pipeline_mode = #tpu.pipeline_mode<synchronous>, transform_indices = @transform_1, window_bounds = array<i64: 9, 8, 8>}, {pipeline_mode = #tpu.pipeline_mode<synchronous>, transform_indices = @transform_2, window_bounds = array<i64: 1, 8>}, {pipeline_mode = #tpu.pipeline_mode<synchronous>, transform_indices = @transform_3, window_bounds = array<i64: 1, 8>}, {transform_indices = @transform_4, window_bounds = array<i64: 40, 8>}]} {
    %c40_i32 = arith.constant 40 : i32
    %0 = arith.muli %arg0, %c40_i32 : i32
    %1 = tpu.assume_multiple %0, 40 : i32
    %2 = arith.index_cast %1 : i32 to index
    %c0 = arith.constant 0 : index
    %3 = vector.load %arg1[%2, %c0] : memref<110x8xbf16, #tpu.memory_space<vmem>>, vector<64x8xbf16>
    %cst = arith.constant 0.000000e+00 : f32
    %4 = vector.broadcast %cst : f32 to vector<40x8xf32>
    %5 = vector.extract_strided_slice %3 {offsets = [0, 0], sizes = [40, 8], strides = [1, 1]} : vector<64x8xbf16> to vector<40x8xbf16>
    %c0_0 = arith.constant 0 : index
    %c0_1 = arith.constant 0 : index
    %c0_2 = arith.constant 0 : index
    %6 = vector.load %arg2[%c0_0, %c0_1, %c0_2] : memref<9x8x8xbf16, #tpu.memory_space<vmem>>, vector<1x8x8xbf16>
    %7 = vector.shape_cast %6 : vector<1x8x8xbf16> to vector<8x8xbf16>
    %cst_3 = arith.constant dense<0.000000e+00> : vector<40x8xf32>
    %8 = tpu.matmul %5, %7, %cst_3 {dimension_numbers = #tpu.dot_dimension_numbers<[1], [0], [0], [1], [0, 0, 1, 1], [], []>} : vector<40x8xbf16>, vector<8x8xbf16>, vector<40x8xf32> -> vector<40x8xf32>
    %9 = arith.addf %4, %8 : vector<40x8xf32>
    %10 = vector.extract_strided_slice %3 {offsets = [1, 0], sizes = [40, 8], strides = [1, 1]} : vector<64x8xbf16> to vector<40x8xbf16>
    %c1 = arith.constant 1 : index
    %c0_4 = arith.constant 0 : index
    %c0_5 = arith.constant 0 : index
    %11 = vector.load %arg2[%c1, %c0_4, %c0_5] : memref<9x8x8xbf16, #tpu.memory_space<vmem>>, vector<1x8x8xbf16>
    %12 = vector.shape_cast %11 : vector<1x8x8xbf16> to vector<8x8xbf16>
    %cst_6 = arith.constant dense<0.000000e+00> : vector<40x8xf32>
    %13 = tpu.matmul %10, %12, %cst_6 {dimension_numbers = #tpu.dot_dimension_numbers<[1], [0], [0], [1], [0, 0, 1, 1], [], []>} : vector<40x8xbf16>, vector<8x8xbf16>, vector<40x8xf32> -> vector<40x8xf32>
    %14 = arith.addf %9, %13 : vector<40x8xf32>
    %15 = vector.extract_strided_slice %3 {offsets = [2, 0], sizes = [40, 8], strides = [1, 1]} : vector<64x8xbf16> to vector<40x8xbf16>
    %c2 = arith.constant 2 : index
    %c0_7 = arith.constant 0 : index
    %c0_8 = arith.constant 0 : index
    %16 = vector.load %arg2[%c2, %c0_7, %c0_8] : memref<9x8x8xbf16, #tpu.memory_space<vmem>>, vector<1x8x8xbf16>
    %17 = vector.shape_cast %16 : vector<1x8x8xbf16> to vector<8x8xbf16>
    %cst_9 = arith.constant dense<0.000000e+00> : vector<40x8xf32>
    %18 = tpu.matmul %15, %17, %cst_9 {dimension_numbers = #tpu.dot_dimension_numbers<[1], [0], [0], [1], [0, 0, 1, 1], [], []>} : vector<40x8xbf16>, vector<8x8xbf16>, vector<40x8xf32> -> vector<40x8xf32>
    %19 = arith.addf %14, %18 : vector<40x8xf32>
    %20 = vector.extract_strided_slice %3 {offsets = [10, 0], sizes = [40, 8], strides = [1, 1]} : vector<64x8xbf16> to vector<40x8xbf16>
    %c3 = arith.constant 3 : index
    %c0_10 = arith.constant 0 : index
    %c0_11 = arith.constant 0 : index
    %21 = vector.load %arg2[%c3, %c0_10, %c0_11] : memref<9x8x8xbf16, #tpu.memory_space<vmem>>, vector<1x8x8xbf16>
    %22 = vector.shape_cast %21 : vector<1x8x8xbf16> to vector<8x8xbf16>
    %cst_12 = arith.constant dense<0.000000e+00> : vector<40x8xf32>
    %23 = tpu.matmul %20, %22, %cst_12 {dimension_numbers = #tpu.dot_dimension_numbers<[1], [0], [0], [1], [0, 0, 1, 1], [], []>} : vector<40x8xbf16>, vector<8x8xbf16>, vector<40x8xf32> -> vector<40x8xf32>
    %24 = arith.addf %19, %23 : vector<40x8xf32>
    %25 = vector.extract_strided_slice %3 {offsets = [11, 0], sizes = [40, 8], strides = [1, 1]} : vector<64x8xbf16> to vector<40x8xbf16>
    %c4 = arith.constant 4 : index
    %c0_13 = arith.constant 0 : index
    %c0_14 = arith.constant 0 : index
    %26 = vector.load %arg2[%c4, %c0_13, %c0_14] : memref<9x8x8xbf16, #tpu.memory_space<vmem>>, vector<1x8x8xbf16>
    %27 = vector.shape_cast %26 : vector<1x8x8xbf16> to vector<8x8xbf16>
    %cst_15 = arith.constant dense<0.000000e+00> : vector<40x8xf32>
    %28 = tpu.matmul %25, %27, %cst_15 {dimension_numbers = #tpu.dot_dimension_numbers<[1], [0], [0], [1], [0, 0, 1, 1], [], []>} : vector<40x8xbf16>, vector<8x8xbf16>, vector<40x8xf32> -> vector<40x8xf32>
    %29 = arith.addf %24, %28 : vector<40x8xf32>
    %30 = vector.extract_strided_slice %3 {offsets = [12, 0], sizes = [40, 8], strides = [1, 1]} : vector<64x8xbf16> to vector<40x8xbf16>
    %c5 = arith.constant 5 : index
    %c0_16 = arith.constant 0 : index
    %c0_17 = arith.constant 0 : index
    %31 = vector.load %arg2[%c5, %c0_16, %c0_17] : memref<9x8x8xbf16, #tpu.memory_space<vmem>>, vector<1x8x8xbf16>
    %32 = vector.shape_cast %31 : vector<1x8x8xbf16> to vector<8x8xbf16>
    %cst_18 = arith.constant dense<0.000000e+00> : vector<40x8xf32>
    %33 = tpu.matmul %30, %32, %cst_18 {dimension_numbers = #tpu.dot_dimension_numbers<[1], [0], [0], [1], [0, 0, 1, 1], [], []>} : vector<40x8xbf16>, vector<8x8xbf16>, vector<40x8xf32> -> vector<40x8xf32>
    %34 = arith.addf %29, %33 : vector<40x8xf32>
    %35 = vector.extract_strided_slice %3 {offsets = [20, 0], sizes = [40, 8], strides = [1, 1]} : vector<64x8xbf16> to vector<40x8xbf16>
    %c6 = arith.constant 6 : index
    %c0_19 = arith.constant 0 : index
    %c0_20 = arith.constant 0 : index
    %36 = vector.load %arg2[%c6, %c0_19, %c0_20] : memref<9x8x8xbf16, #tpu.memory_space<vmem>>, vector<1x8x8xbf16>
    %37 = vector.shape_cast %36 : vector<1x8x8xbf16> to vector<8x8xbf16>
    %cst_21 = arith.constant dense<0.000000e+00> : vector<40x8xf32>
    %38 = tpu.matmul %35, %37, %cst_21 {dimension_numbers = #tpu.dot_dimension_numbers<[1], [0], [0], [1], [0, 0, 1, 1], [], []>} : vector<40x8xbf16>, vector<8x8xbf16>, vector<40x8xf32> -> vector<40x8xf32>
    %39 = arith.addf %34, %38 : vector<40x8xf32>
    %40 = vector.extract_strided_slice %3 {offsets = [21, 0], sizes = [40, 8], strides = [1, 1]} : vector<64x8xbf16> to vector<40x8xbf16>
    %c7 = arith.constant 7 : index
    %c0_22 = arith.constant 0 : index
    %c0_23 = arith.constant 0 : index
    %41 = vector.load %arg2[%c7, %c0_22, %c0_23] : memref<9x8x8xbf16, #tpu.memory_space<vmem>>, vector<1x8x8xbf16>
    %42 = vector.shape_cast %41 : vector<1x8x8xbf16> to vector<8x8xbf16>
    %cst_24 = arith.constant dense<0.000000e+00> : vector<40x8xf32>
    %43 = tpu.matmul %40, %42, %cst_24 {dimension_numbers = #tpu.dot_dimension_numbers<[1], [0], [0], [1], [0, 0, 1, 1], [], []>} : vector<40x8xbf16>, vector<8x8xbf16>, vector<40x8xf32> -> vector<40x8xf32>
    %44 = arith.addf %39, %43 : vector<40x8xf32>
    %45 = vector.extract_strided_slice %3 {offsets = [22, 0], sizes = [40, 8], strides = [1, 1]} : vector<64x8xbf16> to vector<40x8xbf16>
    %c8 = arith.constant 8 : index
    %c0_25 = arith.constant 0 : index
    %c0_26 = arith.constant 0 : index
    %46 = vector.load %arg2[%c8, %c0_25, %c0_26] : memref<9x8x8xbf16, #tpu.memory_space<vmem>>, vector<1x8x8xbf16>
    %47 = vector.shape_cast %46 : vector<1x8x8xbf16> to vector<8x8xbf16>
    %cst_27 = arith.constant dense<0.000000e+00> : vector<40x8xf32>
    %48 = tpu.matmul %45, %47, %cst_27 {dimension_numbers = #tpu.dot_dimension_numbers<[1], [0], [0], [1], [0, 0, 1, 1], [], []>} : vector<40x8xbf16>, vector<8x8xbf16>, vector<40x8xf32> -> vector<40x8xf32>
    %49 = arith.addf %44, %48 : vector<40x8xf32>
    %c0_28 = arith.constant 0 : index
    %c0_29 = arith.constant 0 : index
    %50 = vector.load %arg3[%c0_28, %c0_29] : memref<1x8xf32, #tpu.memory_space<vmem>>, vector<1x8xf32>
    %51 = vector.broadcast %50 : vector<1x8xf32> to vector<40x8xf32>
    %52 = arith.mulf %49, %51 : vector<40x8xf32>
    %c0_30 = arith.constant 0 : index
    %c0_31 = arith.constant 0 : index
    %53 = vector.load %arg4[%c0_30, %c0_31] : memref<1x8xf32, #tpu.memory_space<vmem>>, vector<1x8xf32>
    %54 = vector.broadcast %53 : vector<1x8xf32> to vector<40x8xf32>
    %55 = arith.addf %52, %54 : vector<40x8xf32>
    %cst_32 = arith.constant 0.000000e+00 : f32
    %56 = vector.broadcast %cst_32 : f32 to vector<40x8xf32>
    %57 = arith.maximumf %55, %56 : vector<40x8xf32>
    %58 = arith.truncf %57 : vector<40x8xf32> to vector<40x8xbf16>
    %c0_33 = arith.constant 0 : index
    %c0_34 = arith.constant 0 : index
    %59 = vector.load %arg5[%c0_33, %c0_34] : memref<40x8xbf16, #tpu.memory_space<vmem>>, vector<40x8xbf16>
    tpu.vector_store %arg5[%c0_33, %c0_34], %58 {strides = array<i32>} : memref<40x8xbf16, #tpu.memory_space<vmem>>, vector<40x8xbf16>,
    return
  }
  func.func @transform_0(%arg0: i32) -> (i32, i32) {
    %c0_i32 = arith.constant 0 : i32
    %c0_i32_0 = arith.constant 0 : i32
    %c0_i32_1 = arith.constant 0 : i32
    return %c0_i32, %c0_i32_0 : i32, i32
  }
  func.func @transform_1(%arg0: i32) -> (i32, i32, i32) {
    %c0_i32 = arith.constant 0 : i32
    %c0_i32_0 = arith.constant 0 : i32
    %c0_i32_1 = arith.constant 0 : i32
    %c0_i32_2 = arith.constant 0 : i32
    return %c0_i32, %c0_i32_0, %c0_i32_1 : i32, i32, i32
  }
  func.func @transform_2(%arg0: i32) -> (i32, i32) {
    %c0_i32 = arith.constant 0 : i32
    %c0_i32_0 = arith.constant 0 : i32
    %c0_i32_1 = arith.constant 0 : i32
    return %c0_i32, %c0_i32_0 : i32, i32
  }
  func.func @transform_3(%arg0: i32) -> (i32, i32) {
    %c0_i32 = arith.constant 0 : i32
    %c0_i32_0 = arith.constant 0 : i32
    %c0_i32_1 = arith.constant 0 : i32
    return %c0_i32, %c0_i32_0 : i32, i32
  }
  func.func @transform_4(%arg0: i32) -> (i32, i32) {
    %c0_i32 = arith.constant 0 : i32
    %c0_i32_0 = arith.constant 0 : i32
    return %arg0, %c0_i32 : i32, i32
  }
}

module attributes {stable_mosaic.version = 11 : i64} {
  func.func @_mm_kernel(%arg0: i32, %arg1: memref<1016x27xbf16, #tpu.memory_space<vmem>>, %arg2: memref<27x32xbf16, #tpu.memory_space<vmem>>, %arg3: memref<1x32xf32, #tpu.memory_space<vmem>>, %arg4: memref<1x32xf32, #tpu.memory_space<vmem>>, %arg5: memref<1016x32xbf16, #tpu.memory_space<vmem>>) attributes {dimension_semantics = [#tpu.dimension_semantics<parallel>], iteration_bounds = array<i64: 22>, scalar_prefetch = 0 : i64, scratch_operands = 0 : i64, tpu.core_type = #tpu.core_type<tc>, window_params = [{transform_indices = @transform_0, window_bounds = array<i64: 1016, 27>}, {pipeline_mode = #tpu.pipeline_mode<synchronous>, transform_indices = @transform_1, window_bounds = array<i64: 27, 32>}, {pipeline_mode = #tpu.pipeline_mode<synchronous>, transform_indices = @transform_2, window_bounds = array<i64: 1, 32>}, {pipeline_mode = #tpu.pipeline_mode<synchronous>, transform_indices = @transform_3, window_bounds = array<i64: 1, 32>}, {transform_indices = @transform_4, window_bounds = array<i64: 1016, 32>}]} {
    %c0 = arith.constant 0 : index
    %c0_0 = arith.constant 0 : index
    %0 = vector.load %arg1[%c0, %c0_0] : memref<1016x27xbf16, #tpu.memory_space<vmem>>, vector<1016x27xbf16>
    %c0_1 = arith.constant 0 : index
    %c0_2 = arith.constant 0 : index
    %1 = vector.load %arg2[%c0_1, %c0_2] : memref<27x32xbf16, #tpu.memory_space<vmem>>, vector<27x32xbf16>
    %cst = arith.constant dense<0.000000e+00> : vector<1016x32xf32>
    %2 = tpu.matmul %0, %1, %cst {dimension_numbers = #tpu.dot_dimension_numbers<[1], [0], [0], [1], [0, 0, 1, 1], [], []>} : vector<1016x27xbf16>, vector<27x32xbf16>, vector<1016x32xf32> -> vector<1016x32xf32>
    %c0_3 = arith.constant 0 : index
    %c0_4 = arith.constant 0 : index
    %3 = vector.load %arg3[%c0_3, %c0_4] : memref<1x32xf32, #tpu.memory_space<vmem>>, vector<1x32xf32>
    %4 = vector.broadcast %3 : vector<1x32xf32> to vector<1016x32xf32>
    %5 = arith.mulf %2, %4 : vector<1016x32xf32>
    %c0_5 = arith.constant 0 : index
    %c0_6 = arith.constant 0 : index
    %6 = vector.load %arg4[%c0_5, %c0_6] : memref<1x32xf32, #tpu.memory_space<vmem>>, vector<1x32xf32>
    %7 = vector.broadcast %6 : vector<1x32xf32> to vector<1016x32xf32>
    %8 = arith.addf %5, %7 : vector<1016x32xf32>
    %cst_7 = arith.constant 0.000000e+00 : f32
    %9 = vector.broadcast %cst_7 : f32 to vector<1016x32xf32>
    %10 = arith.maximumf %8, %9 : vector<1016x32xf32>
    %11 = arith.truncf %10 : vector<1016x32xf32> to vector<1016x32xbf16>
    %c0_8 = arith.constant 0 : index
    %c0_9 = arith.constant 0 : index
    %12 = vector.load %arg5[%c0_8, %c0_9] : memref<1016x32xbf16, #tpu.memory_space<vmem>>, vector<1016x32xbf16>
    tpu.vector_store %arg5[%c0_8, %c0_9], %11 {strides = array<i32>} : memref<1016x32xbf16, #tpu.memory_space<vmem>>, vector<1016x32xbf16>,
    return
  }
  func.func @transform_0(%arg0: i32) -> (i32, i32) {
    %c0_i32 = arith.constant 0 : i32
    %c0_i32_0 = arith.constant 0 : i32
    return %arg0, %c0_i32 : i32, i32
  }
  func.func @transform_1(%arg0: i32) -> (i32, i32) {
    %c0_i32 = arith.constant 0 : i32
    %c0_i32_0 = arith.constant 0 : i32
    %c0_i32_1 = arith.constant 0 : i32
    return %c0_i32, %c0_i32_0 : i32, i32
  }
  func.func @transform_2(%arg0: i32) -> (i32, i32) {
    %c0_i32 = arith.constant 0 : i32
    %c0_i32_0 = arith.constant 0 : i32
    %c0_i32_1 = arith.constant 0 : i32
    return %c0_i32, %c0_i32_0 : i32, i32
  }
  func.func @transform_3(%arg0: i32) -> (i32, i32) {
    %c0_i32 = arith.constant 0 : i32
    %c0_i32_0 = arith.constant 0 : i32
    %c0_i32_1 = arith.constant 0 : i32
    return %c0_i32, %c0_i32_0 : i32, i32
  }
  func.func @transform_4(%arg0: i32) -> (i32, i32) {
    %c0_i32 = arith.constant 0 : i32
    %c0_i32_0 = arith.constant 0 : i32
    return %arg0, %c0_i32 : i32, i32
  }
}

</mosaic_0001>

<bundles_post_ra>
// kernel: _conv_bn_relu.1
= control target key start
LH: loop header
LB: loop body
LE: loop exit
PB: predicated region body
PF: predicated region fallthrough
CT: control target
= control target key end

     0   :  { %s1359_s15 = smov 0   ;;  %s1663_s0 = inlined_call_operand.vmem [shape: bf16[110,8], index: 0, kind: input, shape index: {}]   ;;  %s1664_s1 = inlined_call_operand.vmem [shape: bf16[9,8,8], index: 1, kind: input, shape index: {}]   ;;  %s1665_s2 = inlined_call_operand.vmem [shape: f32[1,8], index: 2, kind: input, shape index: {}]   ;;  %s1666_s3 = inlined_call_operand.vmem [shape: f32[1,8], index: 3, kind: input, shape index: {}]   ;;  %s1667_s4 = inlined_call_operand.vmem [shape: bf16[80,8], index: 4, kind: output, shape index: {}]  }
   0x1 LB: > { %s1079_s16 = sadd.s32 4294967295, %s1330_s15   ;;  %p1082_p0 = scmp.ge.s32.totalorder %s1330_s15, 1  ;;  %s1330_s15 = sphi %s1359_s15, %s14_s15  }
   0x2   : > { %p152_p1 = scmp.lt.s32.totalorder %s1330_s15, 3 }
   0x4   : > { %p153_p2 = pnand %p1082_p0, %p152_p1 }
   0x5   : > { %s180_s19 = smul.u32 (!%p153_p2), 40, %s1079_s16 }
   0x6   : > { %156 = sbr.rel (%p153_p2) target bundleno = 332 (0x14c), region = 36 }
   0x7   : > { %s181_s20 = sshra.s32 (!%p153_p2), %s180_s19, 3  ;;  %s173_s17 = smul.u32 (!%p153_p2), 5, %s1079_s16 }
   0x8   : > { %s1084_s21 = sshll.u32 (!%p153_p2), %s181_s20, 2 }
   0x9   : > { %s1381_s24 = scalar_lea.vmem (!%p153_p2), %s1663_s0, %s1084_s21  ;;  %p174_p3 = scmp.lt.s32.totalorder (!%p153_p2), %s173_s17, 9 }
   0xb   : > { %v1085_v0 = vld [vmem:[%s1664_s1 + $0x4] sm:$0xf]  ;;  %vm245_vm0 = vcmask 1043456   ;;  %v1332_v1 = vmov 0.0   ;;  %vm1333_vm1 = vmmov 0   ;;  %vm235_vm3 = vcmask 64512  }
   0xc   : > { %1304 = vmatprep.subr.bf16.mxu1 %v1332_v1  ;;  %v247_v2 = vsel %vm245_vm0, %v1085_v0, 0  ;;  %1184 = vmatprep.mubr.msk.bf16.mxu1 %vm1333_vm1, %v1332_v1  ;;  %v1387_v3 = vld [vmem:[%s1381_s24 + $0x8] sm:$0xf]  ;;  %v1390_v4 = vld [vmem:[%s1381_s24 + $0xc] sm:$0xf]  ;;  %vm374_vm4 = vcmask 1046528  }
   0xd   : > { %1305 = vmatpush3.bf16.msra.mxu1 %v247_v2  ;;  %1178 = vmatprep.subr.bf16.mxu0 %v1332_v1  ;;  %v1393_v5 = vld [vmem:[%s1381_s24 + $0x10] sm:$0xf]  ;;  %v1396_v6 = vld [vmem:[%s1381_s24 + $0x14] sm:$0xf]  ;;  %v1400_v7 = vcombine.low %v1387_v3, %v1390_v4  ;;  %v185_v8 = vld [vmem:[%s1381_s24] sm:$0xf] }
   0xe   : > { %1192 = vmatprep.subr.bf16.mxu1 %v1332_v1  ;;  %1179 = vmatpush3.bf16.msra.mxu0 %v247_v2  ;;  %v1404_v9 = vld [vmem:[%s1381_s24 + $0x4] sm:$0xf]  ;;  %v1408_v10 = vcombine.low %v1393_v5, %v1396_v6  ;;  %v193_v18 = vld [vmem:[%s1664_s1] sm:$0xf]  ;;  %vm211_vm2 = vsmask.f32 7424  ;;  %v1475_v56 = vcombine.low %v1390_v4, %v1393_v5 }
   0xf   : > { %1180 = vmatprep.mubr.msk.bf16.mxu0 %vm1333_vm1, %v1332_v1  ;;  %1206 = vmatprep.subr.bf16.mxu0 %v1332_v1  ;;  %v1411_v11 = vcombine.low %v185_v8, %v1404_v9  ;;  %v220_v12 = vshll.u32 %v1400_v7, 16  ;;  %v224_v13 = vshrl.u32 %v1400_v7, 16  ;;  %v1096_v21 = vld [vmem:[%s1664_s1 + $0x8] sm:$0xf]  ;;  %v314_v23 = vsel %vm245_vm0, %v193_v18, 0  ;;  %s1669_s17 = smov (!%p174_p3, %s173_s17), 9 }
  0x10   : > { %v228_v14 = vshll.u32 %v1408_v10, 16  ;;  %v390_v26 = vsel %vm245_vm0, %v1096_v21, 0  ;;  %v232_v28 = vshrl.u32 %v1408_v10, 16  ;;  %v376_v30 = vrot.slane %v1400_v7, 1  ;;  %v1107_v32 = vld [vmem:[%s1664_s1 + $0x10] sm:$0xf] }
  0x11   : > { %v213_v15 = vshrl.u32 %v1411_v11, 16  ;;  %v215_v16 = vshll.u32 %v1411_v11, 16  ;;  %v222_v17 = vrot.slane %v220_v12, 1  ;;  %v375_v29 = vrot.slane %v1411_v11, 1  ;;  %v192_v37 = vld [vmem:[%s1381_s24 + $0x1c] sm:$0xf] }
  0x12   : > { %v230_v19 = vrot.slane %v228_v14, 1  ;;  %v807_v31 = vrot.slane %v224_v13, 2  ;;  %v808_v33 = vrot.slane %v220_v12, 3  ;;  %v811_v34 = vrot.slane %v228_v14, 3  ;;  %v191_v40 = vld [vmem:[%s1381_s24 + $0x18] sm:$0xf] }
  0x13   : > { %v217_v20 = vrot.slane %v215_v16, 1  ;;  %v226_v22 = vor.u32 %v224_v13, %v222_v17  ;;  %v810_v36 = vrot.slane %v232_v28, 2  ;;  %v377_v38 = vsel %vm374_vm4, %v375_v29, %v376_v30  ;;  %v1100_v52 = vld [vmem:[%s1664_s1 + $0xc] sm:$0xf]  ;;  %v1115_v16 = vld [vmem:[%s1664_s1 + $0x18] sm:$0xf] }
  0x14   : > { %v234_v35 = vor.u32 %v232_v28, %v230_v19  ;;  %v577_v39 = vsel %vm245_vm0, %v1107_v32, 0  ;;  %vm898_vm5 = vcmask 1044480   ;;  %v1444_v41 = vcombine.low %v191_v40, %v192_v37  ;;  %s1083_s21 = sshll.u32 %s1669_s17, 2 }
  0x15   : > { %v218_v24 = vor.u32 %v217_v20, %v213_v15  ;;  %v231_v25 = vsel %vm211_vm2, %v226_v22, %v230_v19  ;;  %v899_v42 = vrot.slane %v1400_v7, 3  ;;  %v900_v43 = vrot.slane %v1408_v10, 3  ;;  %s1646_s24 = scalar_lea.vmem %s1667_s4, %s1083_s21 }
  0x16   : > { %1185 = vmatmul.mubr.msk.bf16.vlgmr.msra.gmra.mxu1 %vm235_vm3, %v231_v25  ;;  %vm806_vm6 = vsmask.f32 5376  ;;  %v809_v44 = vor.u32 %v808_v33, %v807_v31  ;;  %v812_v45 = vor.u32 %v811_v34, %v810_v36  ;;  %v902_v47 = vrot.slane %v1444_v41, 3  ;;  %v1124_v31 = vld [vmem:[%s1664_s1 + $0x20] sm:$0xf] }
  0x17   : > { %v223_v27 = vsel %vm211_vm2, %v218_v24, %v222_v17  ;;  %1193 = vmatpush3.bf16.msra.mxu1 %v314_v23  ;;  %1188 = vmatprep.mubr.msk.bf16.mxu1 %vm1333_vm1, %v1332_v1  ;;  %v1453_v46 = vsel %vm898_vm5, %v899_v42, %v900_v43  ;;  %v815_v48 = vshrl.u32 %v1444_v41, 16  ;;  %v378_v49 = vrot.slane %v1408_v10, 1  ;;  %v1111_v23 = vld [vmem:[%s1664_s1 + $0x14] sm:$0xf] }
  0x18   : > { %1181 = vmatmul.mubr.msk.bf16.vlgmr.msra.gmra.mxu0 %vm235_vm3, %v223_v27  ;;  %1220 = vmatprep.subr.bf16.mxu1 %v1332_v1  ;;  %v1461_v50 = vsel %vm806_vm6, %v809_v44, %v812_v45  ;;  %v818_v51 = vshll.u32 %v1444_v41, 16  ;;  %v1471_v53 = vsel %vm898_vm5, %v900_v43, %v902_v47  ;;  %v1479_v57 = vcombine.low %v1404_v9, %v1387_v3 }
  0x19   : > { %1207 = vmatpush3.bf16.msra.mxu0 %v390_v26  ;;  %1208 = vmatprep.mubr.msk.bf16.mxu0 %vm1333_vm1, %v1332_v1  ;;  %v817_v54 = vrot.slane %v815_v48, 2  ;;  %v475_v58 = vsel %vm245_vm0, %v1100_v52, 0  ;;  %v379_v59 = vsel %vm374_vm4, %v376_v30, %v378_v49  ;;  %v550_v62 = vshrl.u32 %v1475_v56, 16 }
  0x1a   : > { %1234 = vmatprep.subr.bf16.mxu0 %v1332_v1  ;;  %v820_v55 = vrot.slane %v818_v51, 3  ;;  %v542_v63 = vshrl.u32 %v1479_v57, 16  ;;  %v545_v0 = vshll.u32 %v1479_v57, 16  ;;  %v553_v2 = vshll.u32 %v1475_v56, 16 }
  0x1b   : > { %v552_v3 = vrot.slane %v550_v62, 1  ;;  %vm540_vm7 = vsmask.f32 6400  ;;  %v741_v20 = vsel %vm245_vm0, %v1115_v16, 0  ;;  %v460_v21 = vrot.slane %v1479_v57, 1 }
  0x1c   : > { %v1483_v60 = vor.u32 %v820_v55, %v817_v54  ;;  %v544_v4 = vrot.slane %v542_v63, 1  ;;  %v547_v8 = vrot.slane %v545_v0, 2  ;;  %v555_v9 = vrot.slane %v553_v2, 2 }
  0x1d   : > { %v658_v25 = vsel %vm245_vm0, %v1111_v23, 0  ;;  %v726_v29 = vrot.slane %v1400_v7, 2  ;;  %v727_v30 = vrot.slane %v1408_v10, 2  ;;  %vm642_vm8 = vcmask 1045504  }
  0x1e   : > { %1189 = vmatmul.mubr.msk.bf16.gmra.mxu1 %vm235_vm3, %v234_v35  ;;  %v1489_v61 = vsel %vm806_vm6, %v812_v45, %v1483_v60  ;;  %v548_v12 = vor.u32 %v547_v8, %v544_v4  ;;  %v556_v13 = vor.u32 %v555_v9, %v552_v3  ;;  %v914_v33 = vsel %vm245_vm0, %v1124_v31, 0  ;;  %v1120_v35 = vld [vmem:[%s1664_s1 + $0x1c] sm:$0xf] }
  0x1f   : > { %1194 = vmatprep.mubr.msk.bf16.mxu1 %vm1333_vm1, %v1332_v1  ;;  %v728_v32 = vsel %vm642_vm8, %v726_v29, %v727_v30  ;;  %v644_v10 = vrot.slane %v1475_v56, 2  ;;  %v729_v34 = vrot.slane %v1444_v41, 2  ;;  %v833_v37 = vsel %vm245_vm0, %v1120_v35, 0 }
  0x20   : > { %1209 = vmatmul.mubr.msk.bf16.vlgmr.msra.gmra.mxu0 %vm235_vm3, %v377_v38  ;;  %v557_v17 = vsel %vm540_vm7, %v548_v12, %v556_v13  ;;  %vm1027_vm9 = vcmask 60416  }
  0x21   : > { %1235 = vmatpush3.bf16.msra.mxu0 %v577_v39  ;;  %1212 = vmatprep.mubr.msk.bf16.mxu0 %vm1333_vm1, %v1332_v1  ;;  %v730_v38 = vsel %vm642_vm8, %v727_v30, %v729_v34 }
  0x22   : > { %1262 = vmatprep.subr.bf16.mxu0 %v1332_v1 }
  0x26   : > { %1195 = vmatmul.mubr.msk.bf16.vlgmr.msra.gmra.mxu1 %vm235_vm3, %v1411_v11  ;;  %v1502_v11 = vcombine.low %v1396_v6, %v191_v40  ;;  %v1092_v6 = vcombine.low %v1393_v5, %v1393_v5  ;;  %v461_v5 = vrot.slane %v1475_v56, 1 }
  0x27   : > { %1221 = vmatpush3.bf16.msra.mxu1 %v475_v58  ;;  %1198 = vmatprep.mubr.msk.bf16.mxu1 %vm1333_vm1, %v1332_v1 }
  0x28   : > { %1213 = vmatmul.mubr.msk.bf16.gmra.mxu0 %vm235_vm3, %v379_v59  ;;  %1248 = vmatprep.subr.bf16.mxu1 %v1332_v1  ;;  %v559_v14 = vshrl.u32 %v1502_v11, 16  ;;  %v562_v15 = vshll.u32 %v1502_v11, 16  ;;  %v462_v24 = vsel %vm374_vm4, %v460_v21, %v461_v5  ;;  %v463_v27 = vrot.slane %v1502_v11, 1 }
  0x29   : > { %1216 = vmatprep.mubr.msk.bf16.mxu0 %vm1333_vm1, %v1332_v1  ;;  %v646_v39 = vrot.slane %v1502_v11, 2 }
  0x2a   : > { %v561_v18 = vrot.slane %v559_v14, 1  ;;  %v564_v19 = vrot.slane %v562_v15, 2  ;;  %v464_v28 = vsel %vm374_vm4, %v461_v5, %v463_v27 }
  0x2b   : > { %v647_v40 = vsel %vm642_vm8, %v644_v10, %v646_v39 }
  0x2c   : > { %v565_v22 = vor.u32 %v564_v19, %v561_v18 }
  0x2e   : > { %1199 = vmatmul.mubr.msk.bf16.gmra.mxu1 %vm235_vm3, %v1400_v7  ;;  %v566_v26 = vsel %vm540_vm7, %v556_v13, %v565_v22  ;;  %v643_v7 = vrot.slane %v1479_v57, 2 }
  0x2f   : > { %1202 = vmatprep.mubr.msk.bf16.mxu1 %vm1333_vm1, %v1332_v1 }
  0x30   : > { %1217 = vmatmul.mubr.msk.bf16.gmra.mxu0 %vm235_vm3, %v378_v49  ;;  %v645_v36 = vsel %vm642_vm8, %v643_v7, %v644_v10 }
  0x31   : > { %1236 = vmatprep.mubr.msk.bf16.mxu0 %vm1333_vm1, %v1332_v1 }
  0x36   : > { %1203 = vmatmul.mubr.msk.bf16.gmra.mxu1 %vm235_vm3, %v1092_v6 }
  0x37   : > { %1222 = vmatprep.mubr.msk.bf16.mxu1 %vm1333_vm1, %v1332_v1 }
  0x38   : > { %1237 = vmatmul.mubr.msk.bf16.vlgmr.msra.gmra.mxu0 %vm235_vm3, %v557_v17 }
  0x39   : > { %1263 = vmatpush3.bf16.msra.mxu0 %v741_v20  ;;  %1240 = vmatprep.mubr.msk.bf16.mxu0 %vm1333_vm1, %v1332_v1 }
  0x3a   : > { %1290 = vmatprep.subr.bf16.mxu0 %v1332_v1 }
  0x3e   : > { %1223 = vmatmul.mubr.msk.bf16.vlgmr.msra.gmra.mxu1 %vm235_vm3, %v462_v24 }
  0x3f   : > { %1249 = vmatpush3.bf16.msra.mxu1 %v658_v25  ;;  %1226 = vmatprep.mubr.msk.bf16.mxu1 %vm1333_vm1, %v1332_v1 }
  0x40   : > { %1241 = vmatmul.mubr.msk.bf16.gmra.mxu0 %vm235_vm3, %v566_v26  ;;  %1276 = vmatprep.subr.bf16.mxu1 %v1332_v1 }
  0x41   : > { %1244 = vmatprep.mubr.msk.bf16.mxu0 %vm1333_vm1, %v1332_v1 }
  0x46   : > { %1227 = vmatmul.mubr.msk.bf16.gmra.mxu1 %vm235_vm3, %v464_v28 }
  0x47   : > { %1230 = vmatprep.mubr.msk.bf16.mxu1 %vm1333_vm1, %v1332_v1 }
  0x48   : > { %1245 = vmatmul.mubr.msk.bf16.gmra.mxu0 %vm235_vm3, %v565_v22 }
  0x49   : > { %1264 = vmatprep.mubr.msk.bf16.mxu0 %vm1333_vm1, %v1332_v1 }
  0x4e   : > { %1231 = vmatmul.mubr.msk.bf16.gmra.mxu1 %vm235_vm3, %v463_v27 }
  0x4f   : > { %1250 = vmatprep.mubr.msk.bf16.mxu1 %vm1333_vm1, %v1332_v1 }
  0x50   : > { %1265 = vmatmul.mubr.msk.bf16.vlgmr.msra.gmra.mxu0 %vm235_vm3, %v728_v32 }
  0x51   : > { %1291 = vmatpush3.bf16.msra.mxu0 %v914_v33  ;;  %1268 = vmatprep.mubr.msk.bf16.mxu0 %vm1333_vm1, %v1332_v1 }
  0x56   : > { %1251 = vmatmul.mubr.msk.bf16.vlgmr.msra.gmra.mxu1 %vm235_vm3, %v645_v36 }
  0x57   : > { %1277 = vmatpush3.bf16.msra.mxu1 %v833_v37  ;;  %1254 = vmatprep.mubr.msk.bf16.mxu1 %vm1333_vm1, %v1332_v1 }
  0x58   : > { %1269 = vmatmul.mubr.msk.bf16.gmra.mxu0 %vm235_vm3, %v730_v38 }
  0x59   : > { %1272 = vmatprep.mubr.msk.bf16.mxu0 %vm1333_vm1, %v1332_v1 }
  0x5e   : > { %1255 = vmatmul.mubr.msk.bf16.gmra.mxu1 %vm235_vm3, %v647_v40 }
  0x5f   : > { %1258 = vmatprep.mubr.msk.bf16.mxu1 %vm1333_vm1, %v1332_v1 }
  0x60   : > { %1273 = vmatmul.mubr.msk.bf16.gmra.mxu0 %vm235_vm3, %v729_v34 }
  0x61   : > { %1292 = vmatprep.mubr.msk.bf16.mxu0 %vm1333_vm1, %v1332_v1 }
  0x66   : > { %1259 = vmatmul.mubr.msk.bf16.gmra.mxu1 %vm235_vm3, %v646_v39 }
  0x67   : > { %1278 = vmatprep.mubr.msk.bf16.mxu1 %vm1333_vm1, %v1332_v1 }
  0x68   : > { %1293 = vmatmul.mubr.msk.bf16.vlgmr.msra.gmra.mxu0 %vm235_vm3, %v1453_v46 }
  0x69   : > { %1296 = vmatprep.mubr.msk.bf16.mxu0 %vm1333_vm1, %v1332_v1 }
  0x6e   : > { %1279 = vmatmul.mubr.msk.bf16.vlgmr.msra.gmra.mxu1 %vm235_vm3, %v1461_v50 }
  0x6f   : > { %1282 = vmatprep.mubr.msk.bf16.mxu1 %vm1333_vm1, %v1332_v1 }
  0x70   : > { %1297 = vmatmul.mubr.msk.bf16.gmra.mxu0 %vm235_vm3, %v1471_v53 }
  0x71   : > { %1300 = vmatprep.mubr.msk.bf16.mxu0 %vm1333_vm1, %v1332_v1 }
  0x76   : > { %1283 = vmatmul.mubr.msk.bf16.gmra.mxu1 %vm235_vm3, %v1489_v61 }
  0x77   : > { %1286 = vmatprep.mubr.msk.bf16.mxu1 %vm1333_vm1, %v1332_v1 }
  0x78   : > { %1301 = vmatmul.mubr.msk.bf16.gmra.mxu0 %vm235_vm3, %v902_v47 }
  0x7e   : > { %1287 = vmatmul.mubr.msk.bf16.gmra.mxu1 %vm235_vm3, %v1483_v60 }
  0xd6   : > { %v291_v42 = vpop.f32.mrf.mxu1 }
  0xd8   : > { %v283_v43 = vpop.f32.mrf.mxu0  ;;  %v1186_v44 = vpop.f32.mrf.mxu1 }
  0xda   : > { %v1182_v45 = vpop.f32.mrf.mxu0  ;;  %v294_v46 = vpop.f32.mrf.mxu1 }
  0xdc   : > { %v286_v48 = vpop.f32.mrf.mxu0  ;;  %v1187_v49 = vpop.f32.mrf.mxu1 }
  0xde   : > { %v1183_v50 = vpop.f32.mrf.mxu0  ;;  %v299_v51 = vpop.f32.mrf.mxu1 }
  0xe0   : > { %v426_v52 = vpop.f32.mrf.mxu0  ;;  %v1190_v53 = vpop.f32.mrf.mxu1 }
  0xe2   : > { %v1210_v41 = vpop.f32.mrf.mxu0  ;;  %v302_v54 = vpop.f32.mrf.mxu1 }
  0xe4   : > { %v429_v47 = vpop.f32.mrf.mxu0  ;;  %v1191_v55 = vpop.f32.mrf.mxu1 }
  0xe6   : > { %v1211_v56 = vpop.f32.mrf.mxu0  ;;  %v350_v1 = vpop.f32.mrf.mxu1 }
  0xe7   : > { %v351_v57 = vadd.f32 %v350_v1, %v283_v43 }
  0xe8   : > { %v434_v58 = vpop.f32.mrf.mxu0  ;;  %v1196_v59 = vpop.f32.mrf.mxu1 }
  0xe9   : > { %v1610_v61 = vadd.f32 %v426_v52, %v351_v57 }
  0xea   : > { %v1214_v60 = vpop.f32.mrf.mxu0  ;;  %v353_v62 = vpop.f32.mrf.mxu1 }
  0xeb   : > { %v354_v63 = vadd.f32 %v353_v62, %v286_v48 }
  0xec   : > { %v437_v0 = vpop.f32.mrf.mxu0  ;;  %v1197_v2 = vpop.f32.mrf.mxu1 }
  0xed   : > { %v1612_v4 = vadd.f32 %v429_v47, %v354_v63 }
  0xee   : > { %v1215_v3 = vpop.f32.mrf.mxu0  ;;  %v358_v8 = vpop.f32.mrf.mxu1 }
  0xef   : > { %v359_v9 = vadd.f32 %v358_v8, %v291_v42 }
  0xf0   : > { %v442_v11 = vpop.f32.mrf.mxu0  ;;  %v1200_v12 = vpop.f32.mrf.mxu1 }
  0xf1   : > { %v1614_v14 = vadd.f32 %v434_v58, %v359_v9 }
  0xf2   : > { %v1218_v13 = vpop.f32.mrf.mxu0  ;;  %v361_v15 = vpop.f32.mrf.mxu1 }
  0xf3   : > { %v362_v6 = vadd.f32 %v361_v15, %v294_v46 }
  0xf4   : > { %v445_v16 = vpop.f32.mrf.mxu0  ;;  %v1201_v17 = vpop.f32.mrf.mxu1 }
  0xf5   : > { %v1616_v19 = vadd.f32 %v437_v0, %v362_v6 }
  0xf6   : > { %v1219_v18 = vpop.f32.mrf.mxu0  ;;  %v366_v20 = vpop.f32.mrf.mxu1 }
  0xf7   : > { %v367_v21 = vadd.f32 %v366_v20, %v299_v51 }
  0xf8   : > { %v613_v5 = vpop.f32.mrf.mxu0  ;;  %v1204_v22 = vpop.f32.mrf.mxu1 }
  0xf9   : > { %v1618_v24 = vadd.f32 %v442_v11, %v367_v21 }
  0xfa   : > { %v1238_v23 = vpop.f32.mrf.mxu0  ;;  %v369_v25 = vpop.f32.mrf.mxu1 }
  0xfc   : > { %v616_v26 = vpop.f32.mrf.mxu0  ;;  %v1205_v27 = vpop.f32.mrf.mxu1 }
  0xfe   : > { %v1239_v28 = vpop.f32.mrf.mxu0  ;;  %v511_v29 = vpop.f32.mrf.mxu1 }
  0xff   : > { %v533_v0 = vadd.f32 %v511_v29, %v1610_v61 }
 0x100   : > { %v621_v30 = vpop.f32.mrf.mxu0  ;;  %v1224_v31 = vpop.f32.mrf.mxu1 }
 0x101   : > { %v635_v12 = vadd.f32 %v613_v5, %v533_v0  ;;  %v1128_v31 = vld [vmem:[%s1665_s2] ss:$0 sm:$0xff] }
 0x102   : > { %v1242_v32 = vpop.f32.mrf.mxu0  ;;  %v514_v33 = vpop.f32.mrf.mxu1 }
 0x103   : > { %v534_v11 = vadd.f32 %v514_v33, %v1612_v4 }
 0x104   : > { %v1620_v7 = vpop.f32.mrf.mxu0  ;;  %v1225_v10 = vpop.f32.mrf.mxu1 }
 0x105   : > { %v636_v20 = vadd.f32 %v616_v26, %v534_v11 }
 0x106   : > { %v1243_v34 = vpop.f32.mrf.mxu0  ;;  %v519_v35 = vpop.f32.mrf.mxu1 }
 0x107   : > { %v535_v18 = vadd.f32 %v519_v35, %v1614_v14 }
 0x108   : > { %v1622_v36 = vpop.f32.mrf.mxu0  ;;  %v1228_v37 = vpop.f32.mrf.mxu1 }
 0x109   : > { %v637_v5 = vadd.f32 %v621_v30, %v535_v18 }
 0x10a   : > { %v1246_v38 = vpop.f32.mrf.mxu0  ;;  %v522_v39 = vpop.f32.mrf.mxu1 }
 0x10b   : > { %v536_v27 = vadd.f32 %v522_v39, %v1616_v19  ;;  %v1129_v19 = vld [vmem:[%s1666_s3] ss:$0 sm:$0xff] }
 0x10c   : > { %v632_v40 = vpop.f32.mrf.mxu0  ;;  %v1229_v42 = vpop.f32.mrf.mxu1 }
 0x10d   : > { %v638_v34 = vadd.f32 %v1620_v7, %v536_v27 }
 0x10e   : > { %v1247_v43 = vpop.f32.mrf.mxu0  ;;  %v527_v44 = vpop.f32.mrf.mxu1 }
 0x10f   : > { %v537_v30 = vadd.f32 %v527_v44, %v1618_v24 }
 0x110   : > { %v777_v45 = vpop.f32.mrf.mxu0  ;;  %v1232_v46 = vpop.f32.mrf.mxu1 }
 0x111   : > { %v639_v7 = vadd.f32 %v1622_v36, %v537_v30 }
 0x112   : > { %v1266_v48 = vpop.f32.mrf.mxu0  ;;  %v530_v49 = vpop.f32.mrf.mxu1 }
 0x114   : > { %v780_v50 = vpop.f32.mrf.mxu0  ;;  %v1233_v51 = vpop.f32.mrf.mxu1 }
 0x116   : > { %v1267_v52 = vpop.f32.mrf.mxu0  ;;  %v694_v53 = vpop.f32.mrf.mxu1 }
 0x117   : > { %v716_v6 = vadd.f32 %v694_v53, %v635_v12 }
 0x118   : > { %v785_v41 = vpop.f32.mrf.mxu0  ;;  %v1252_v54 = vpop.f32.mrf.mxu1 }
 0x119   : > { %v799_v23 = vadd.f32 %v777_v45, %v716_v6 }
 0x11a   : > { %v1270_v47 = vpop.f32.mrf.mxu0  ;;  %v697_v55 = vpop.f32.mrf.mxu1 }
 0x11b   : > { %v717_v61 = vadd.f32 %v697_v55, %v636_v20 }
 0x11c   : > { %v1624_v56 = vpop.f32.mrf.mxu0  ;;  %v1253_v1 = vpop.f32.mrf.mxu1 }
 0x11d   : > { %v800_v26 = vadd.f32 %v780_v50, %v717_v61 }
 0x11e   : > { %v1271_v57 = vpop.f32.mrf.mxu0  ;;  %v702_v58 = vpop.f32.mrf.mxu1 }
 0x11f   : > { %v718_v33 = vadd.f32 %v702_v58, %v637_v5 }
 0x120   : > { %v1626_v59 = vpop.f32.mrf.mxu0  ;;  %v1256_v60 = vpop.f32.mrf.mxu1 }
 0x121   : > { %v801_v46 = vadd.f32 %v785_v41, %v718_v33 }
 0x122   : > { %v1274_v62 = vpop.f32.mrf.mxu0  ;;  %v705_v63 = vpop.f32.mrf.mxu1 }
 0x123   : > { %v719_v40 = vadd.f32 %v705_v63, %v638_v34 }
 0x124   : > { %v796_v2 = vpop.f32.mrf.mxu0  ;;  %v1257_v3 = vpop.f32.mrf.mxu1 }
 0x125   : > { %v802_v44 = vadd.f32 %v1624_v56, %v719_v40 }
 0x126   : > { %v1275_v8 = vpop.f32.mrf.mxu0  ;;  %v710_v9 = vpop.f32.mrf.mxu1 }
 0x127   : > { %v720_v54 = vadd.f32 %v710_v9, %v639_v7 }
 0x128   : > { %v950_v13 = vpop.f32.mrf.mxu0  ;;  %v1260_v15 = vpop.f32.mrf.mxu1 }
 0x129   : > { %v803_v56 = vadd.f32 %v1626_v59, %v720_v54 }
 0x12a   : > { %v1294_v16 = vpop.f32.mrf.mxu0  ;;  %v713_v17 = vpop.f32.mrf.mxu1 }
 0x12c   : > { %v953_v21 = vpop.f32.mrf.mxu0  ;;  %v1261_v22 = vpop.f32.mrf.mxu1 }
 0x12e   : > { %v1295_v25 = vpop.f32.mrf.mxu0  ;;  %v869_v4 = vpop.f32.mrf.mxu1 }
 0x12f   : > { %v891_v28 = vadd.f32 %v869_v4, %v799_v23 }
 0x130   : > { %v958_v29 = vpop.f32.mrf.mxu0  ;;  %v1280_v32 = vpop.f32.mrf.mxu1 }
 0x131   : > { %v972_v14 = vadd.f32 %v950_v13, %v891_v28 }
 0x132   : > { %v1298_v10 = vpop.f32.mrf.mxu0  ;;  %v872_v35 = vpop.f32.mrf.mxu1 }
 0x133   : > { %v984_v37 = vmul.f32 %v1128_v31, %v972_v14  ;;  %v892_v38 = vadd.f32 %v872_v35, %v800_v26 }
 0x134   : > { %v961_v39 = vpop.f32.mrf.mxu0  ;;  %v1281_v42 = vpop.f32.mrf.mxu1 }
 0x135   : > { %v996_v43 = vadd.f32 %v1129_v19, %v984_v37  ;;  %v973_v45 = vadd.f32 %v953_v21, %v892_v38 }
 0x136   : > { %v1299_v48 = vpop.f32.mrf.mxu0  ;;  %v877_v49 = vpop.f32.mrf.mxu1 }
 0x137   : > { %v1001_v50 = vmax.f32 %v996_v43, 0.0  ;;  %v985_v51 = vmul.f32 %v1128_v31, %v973_v45  ;;  %v893_v52 = vadd.f32 %v877_v49, %v801_v46 }
 0x138   : > { %v966_v53 = vpop.f32.mrf.mxu0  ;;  %v1284_v24 = vpop.f32.mrf.mxu1 }
 0x139   : > { %v1137_v41 = vpack.c.bf16 %v1001_v50, %v1001_v50  ;;  %v997_v47 = vadd.f32 %v1129_v19, %v985_v51  ;;  %v974_v55 = vadd.f32 %v958_v29, %v893_v52 }
 0x13a   : > { %v1302_v36 = vpop.f32.mrf.mxu0  ;;  %v880_v1 = vpop.f32.mrf.mxu1 }
 0x13b   : > { %1028 = vst.msk [vmem:[%s1646_s24] sm:$0xf] %vm1027_vm9, %v1137_v41  ;;  %v1002_v57 = vmax.f32 %v997_v47, 0.0  ;;  %v986_v58 = vmul.f32 %v1128_v31, %v974_v55  ;;  %v894_v60 = vadd.f32 %v880_v1, %v802_v44 }
 0x13c   : > { %v969_v62 = vpop.f32.mrf.mxu0  ;;  %v1285_v63 = vpop.f32.mrf.mxu1 }
 0x13d   : > { %v1138_v0 = vpack.c.bf16 %v1002_v57, %v1002_v57  ;;  %v998_v2 = vadd.f32 %v1129_v19, %v986_v58  ;;  %v975_v3 = vadd.f32 %v961_v39, %v894_v60 }
 0x13e   : > { %v1303_v8 = vpop.f32.mrf.mxu0  ;;  %v885_v9 = vpop.f32.mrf.mxu1 }
 0x13f   : > { %1029 = vst.msk [vmem:[%s1646_s24 + $0x4] sm:$0xf] %vm1027_vm9, %v1138_v0  ;;  %v1003_v11 = vmax.f32 %v998_v2, 0.0  ;;  %v987_v12 = vmul.f32 %v1128_v31, %v975_v3  ;;  %v895_v13 = vadd.f32 %v885_v9, %v803_v56 }
 0x140   : > { %v1288_v15 = vpop.f32.mrf.mxu1 }
 0x141   : > { %v1139_v6 = vpack.c.bf16 %v1003_v11, %v1003_v11  ;;  %v999_v16 = vadd.f32 %v1129_v19, %v987_v12  ;;  %v976_v17 = vadd.f32 %v966_v53, %v895_v13 }
 0x142   : > { %v888_v18 = vpop.f32.mrf.mxu1 }
 0x143   : > { %1030 = vst.msk [vmem:[%s1646_s24 + $0x8] sm:$0xf] %vm1027_vm9, %v1139_v6  ;;  %v1004_v20 = vmax.f32 %v999_v16, 0.0  ;;  %v988_v21 = vmul.f32 %v1128_v31, %v976_v17 }
 0x144   : > { %v1289_v22 = vpop.f32.mrf.mxu1 }
 0x145   : > { %v1140_v59 = vpack.c.bf16 %v1004_v20, %v1004_v20  ;;  %v1000_v61 = vadd.f32 %v1129_v19, %v988_v21 }
 0x147   : > { %1031 = vst.msk [vmem:[%s1646_s24 + $0xc] sm:$0xf] %vm1027_vm9, %v1140_v59  ;;  %v1005_v23 = vmax.f32 %v1000_v61, 0.0 }
 0x149   : > { %v1141_v25 = vpack.c.bf16 %v1005_v23, %v1005_v23 }
 0x14b   : > { %1032 = vst.msk [vmem:[%s1646_s24 + $0x10] sm:$0xf] %vm1027_vm9, %v1141_v25 }
 0x14c PF: > { %s14_s15 = sadd.s32 1, %s1330_s15  }
 0x14d   : > { %p11_p4 = scmp.ge.s32.totalorder %s14_s15, 4  }
 0x14f   :  { %13 = sbr.rel (!%p11_p4) target bundleno = 1 (0x1), region = 72 }

// kernel: _conv_bn_relu.1
= control target key start
LH: loop header
LB: loop body
LE: loop exit
PB: predicated region body
PF: predicated region fallthrough
CT: control target
= control target key end

     0   :  { %s3807_s15 = smov 0   ;;  %s3809_s16 = smov 0   ;;  %s4710_s0 = inlined_call_operand.vmem [shape: bf16[22201,27], index: 0, kind: input, shape index: {}]   ;;  %s4711_s1 = inlined_call_operand.vmem [shape: bf16[27,32], index: 1, kind: input, shape index: {}]   ;;  %s4712_s2 = inlined_call_operand.vmem [shape: f32[1,32], index: 2, kind: input, shape index: {}]   ;;  %s4713_s3 = inlined_call_operand.vmem [shape: f32[1,32], index: 3, kind: input, shape index: {}]   ;;  %s4714_s4 = inlined_call_operand.vmem [shape: bf16[22201,32], index: 4, kind: output, shape index: {}]  }
   0x1   :  { %s3811_s17 = smov 0  }
   0x2 LB: > { %s3820_s18 = sadd.s32 4294967295, %s3747_s17   ;;  %s3822_s19 = sadd.s32 1, %s3747_s17   ;;  %s3747_s17 = sphi %s3811_s17, %s4721_s17   ;;  %s3743_s16 = sphi %s3809_s16, %s4720_s16   ;;  %s3739_s15 = sphi %s3807_s15, %s4719_s15  }
   0x3   : > { %s107_s20 = ssub.s32 %s3747_s17, %s3822_s19  ;;  %s110_s21 = sadd.s32 1, %s3743_s16 }
   0x4   : > { %p108_p0 = scmp.eq.s32.totalorder %s107_s20, 0  ;;  %p120_p1 = scmp.ne.s32.totalorder %s3743_s16, %s3739_s15 }
   0x5   : > { %p121_p2 = scmp.eq.s32.totalorder %s3820_s18, 21  ;;  %p2927_p3 = scmp.ge.s32.totalorder %s3747_s17, 1 }
   0x6   : > { %s3830_s22 = scalar_select %p108_p0, %s3743_s16, %s110_s21  }
   0x7   : > { %p3832_p4 = por %p121_p2, %p120_p1  ;;  %p171_p5 = scmp.lt.s32.totalorder %s3747_s17, 23 }
   0x9   : > { %p172_p6 = pnand %p2927_p3, %p171_p5 }
   0xa   : > { %s3840_s26 = smul.u32 (!%p172_p6), 127, %s3820_s18  ;;  %s197_s10 = sand.u32 (!%p172_p6), 1, %s3739_s15  }
   0xb   : > { %175 = sbr.rel (%p172_p6) target bundleno = 439 (0x1b7), region = 36 }
   0xc   : > { %p205_p7 = scmp.lt.s32.totalorder (!%p172_p6), %s3840_s26, 2775  ;;  %s3535_s13 = smul.u32 (!%p172_p6), 508, %s197_s10 }
   0xe   : > { %s4005_s14 = scalar_lea.vmem (!%p172_p6), [#allocation2], %s3535_s13  }
  0x10   : > { %v3625_v0 = vld [vmem:[%s4711_s1 + $0x8] sm:$0x3f]   ;;  %vm873_vm0 = vcmask 1044480   ;;  %vm874_vm1 = vcmask 1045504   ;;  %v3781_v1 = vmov 65535   ;;  %v3626_v5 = vld [vmem:[%s4711_s1] sm:$0xff]  }
  0x11   : > { %v875_v2 = vsel %vm873_vm0, 4294967295, %v3781_v1  ;;  %s206_s29 = scalar_select %p205_p7, %s3840_s26, 2775  ;;  %vm680_vm2 = vcmask 220160   ;;  %vm2328_vm3 = vcmask 257024  }
  0x12   : > { %v876_v3 = vsel %vm874_vm1, %v875_v2, 0  ;;  %s2464_s24 = ssub.s32 (%p3832_p4), 2776, %s3840_s26  ;;  %s3330_s25 = smul.u32 (%p3832_p4), 508, %s3820_s18 }
  0x13   : > { %v878_v4 = vand.u32 %v3625_v0, %v876_v3  ;;  %s2928_s30 = sshll.u32 %s206_s29, 2  ;;  %p2465_p8 = scmp.lt.s32.totalorder (%p3832_p4), %s2464_s24, 127 }
  0x14   : > { %s3850_s7 = scalar_lea.vmem %s4710_s0, %s2928_s30  ;;  %s4518_s29 = scalar_lea.vmem (%p3832_p4), %s4714_s4, %s3330_s25  }
  0x15   : > { %3399 = vmatprep.subr.bf16.mxu0 %v878_v4  ;;  %3531 = vmatprep.subr.bf16.mxu1 %v878_v4  ;;  %v3627_v6 = vld [vmem:[%s3850_s7] sm:$0xff]   ;;  %v3629_v8 = vld [vmem:[%s3850_s7 + $0x8] sm:$0xff]   ;;  %v3631_v10 = vld [vmem:[%s3850_s7 + $0x10] sm:$0xff]  }
  0x16   : > { %3400 = vmatpush3.bf16.msra.mxu0 %v878_v4  ;;  %3533 = vmatpush3.bf16.msra.mxu1 %v878_v4  ;;  %v3628_v7 = vld [vmem:[%s3850_s7 + $0x100] sm:$0xff]   ;;  %v3630_v9 = vld [vmem:[%s3850_s7 + $0x108] sm:$0xff]   ;;  %v3632_v11 = vld [vmem:[%s3850_s7 + $0x110] sm:$0xff]  }
  0x17   : > { %3401 = vmatprep.subr.bf16.mxu0 %v3626_v5  ;;  %3532 = vmatprep.subr.bf16.mxu1 %v3626_v5  ;;  %v3633_v12 = vld [vmem:[%s3850_s7 + $0x18] sm:$0xff]   ;;  %v3635_v14 = vld [vmem:[%s3850_s7 + $0x20] sm:$0xff]   ;;  %v3637_v16 = vld [vmem:[%s3850_s7 + $0x28] sm:$0xff]  }
  0x18   : > { %3403 = vmatprep.mubr.msk.bf16.mxu0 %vm680_vm2, %v3627_v6  ;;  %3467 = vmatprep.mubr.msk.bf16.mxu1 %vm680_vm2, %v3628_v7  ;;  %v3634_v13 = vld [vmem:[%s3850_s7 + $0x118] sm:$0xff]   ;;  %v3636_v15 = vld [vmem:[%s3850_s7 + $0x120] sm:$0xff]   ;;  %v3638_v17 = vld [vmem:[%s3850_s7 + $0x128] sm:$0xff]  }
  0x19   : > { %v3639_v18 = vld [vmem:[%s3850_s7 + $0x30] sm:$0xff]   ;;  %v3641_v20 = vld [vmem:[%s3850_s7 + $0x38] sm:$0xff]   ;;  %v3643_v22 = vld [vmem:[%s3850_s7 + $0x40] sm:$0xff]  }
  0x1a   : > { %3402 = vmatpush3.bf16.msra.mxu0 %v3626_v5  ;;  %3534 = vmatpush3.bf16.msra.mxu1 %v3626_v5  ;;  %v3640_v19 = vld [vmem:[%s3850_s7 + $0x130] sm:$0xff]   ;;  %v3642_v21 = vld [vmem:[%s3850_s7 + $0x138] sm:$0xff]   ;;  %v3644_v23 = vld [vmem:[%s3850_s7 + $0x140] sm:$0xff]  }
  0x1b   : > { %v3645_v24 = vld [vmem:[%s3850_s7 + $0x48] sm:$0xff]   ;;  %v3647_v26 = vld [vmem:[%s3850_s7 + $0x50] sm:$0xff]   ;;  %v3649_v28 = vld [vmem:[%s3850_s7 + $0x58] sm:$0xff]  }
  0x1c   : > { %v3646_v25 = vld [vmem:[%s3850_s7 + $0x148] sm:$0xff]   ;;  %v3648_v27 = vld [vmem:[%s3850_s7 + $0x150] sm:$0xff]   ;;  %v3650_v29 = vld [vmem:[%s3850_s7 + $0x158] sm:$0xff]  }
  0x1d   : > { %3404 = vmatmul.mubr.msk.bf16.vlgmr.msra.gmra.mxu0 %vm680_vm2, %v3629_v8  ;;  %3468 = vmatmul.mubr.msk.bf16.vlgmr.msra.gmra.mxu1 %vm680_vm2, %v3630_v9  ;;  %v3651_v30 = vld [vmem:[%s3850_s7 + $0x60] sm:$0xff]   ;;  %v3653_v32 = vld [vmem:[%s3850_s7 + $0x68] sm:$0xff]   ;;  %v3655_v34 = vld [vmem:[%s3850_s7 + $0x70] sm:$0xff]  }
  0x1e   : > { %3407 = vmatprep.mubr.msk.bf16.mxu0 %vm680_vm2, %v3631_v10  ;;  %3471 = vmatprep.mubr.msk.bf16.mxu1 %vm680_vm2, %v3632_v11  ;;  %v3652_v31 = vld [vmem:[%s3850_s7 + $0x160] sm:$0xff]   ;;  %v3654_v33 = vld [vmem:[%s3850_s7 + $0x168] sm:$0xff]   ;;  %v3656_v35 = vld [vmem:[%s3850_s7 + $0x170] sm:$0xff]  }
  0x1f   : > { %v3657_v36 = vld [vmem:[%s3850_s7 + $0x78] sm:$0xff]   ;;  %v3659_v38 = vld [vmem:[%s3850_s7 + $0x80] sm:$0xff]   ;;  %v3661_v40 = vld [vmem:[%s3850_s7 + $0x88] sm:$0xff]  }
  0x20   : > { %v3658_v37 = vld [vmem:[%s3850_s7 + $0x178] sm:$0xff]   ;;  %v3660_v39 = vld [vmem:[%s3850_s7 + $0x180] sm:$0xff]   ;;  %v3662_v41 = vld [vmem:[%s3850_s7 + $0x188] sm:$0xff]  }
  0x21   : > { %v3663_v42 = vld [vmem:[%s3850_s7 + $0x90] sm:$0xff]   ;;  %v3665_v44 = vld [vmem:[%s3850_s7 + $0x98] sm:$0xff]   ;;  %v3667_v46 = vld [vmem:[%s3850_s7 + $0xa0] sm:$0xff]  }
  0x22   : > { %v3664_v43 = vld [vmem:[%s3850_s7 + $0x190] sm:$0xff]   ;;  %v3666_v45 = vld [vmem:[%s3850_s7 + $0x198] sm:$0xff]   ;;  %v3668_v47 = vld [vmem:[%s3850_s7 + $0x1a0] sm:$0xff]  }
  0x23   : > { %v3669_v48 = vld [vmem:[%s3850_s7 + $0xa8] sm:$0xff]   ;;  %v3671_v50 = vld [vmem:[%s3850_s7 + $0xb0] sm:$0xff]   ;;  %v3673_v52 = vld [vmem:[%s3850_s7 + $0xb8] sm:$0xff]  }
  0x24   : > { %v3670_v49 = vld [vmem:[%s3850_s7 + $0x1a8] sm:$0xff]   ;;  %v3672_v51 = vld [vmem:[%s3850_s7 + $0x1b0] sm:$0xff]   ;;  %v3674_v53 = vld [vmem:[%s3850_s7 + $0x1b8] sm:$0xff]  }
  0x25   : > { %3408 = vmatmul.mubr.msk.bf16.gmra.mxu0 %vm680_vm2, %v3633_v12  ;;  %3472 = vmatmul.mubr.msk.bf16.gmra.mxu1 %vm680_vm2, %v3634_v13  ;;  %v3675_v54 = vld [vmem:[%s3850_s7 + $0xc0] sm:$0xff]   ;;  %v3677_v56 = vld [vmem:[%s3850_s7 + $0xc8] sm:$0xff]   ;;  %v3679_v58 = vld [vmem:[%s3850_s7 + $0xd0] sm:$0xff]  }
  0x26   : > { %3411 = vmatprep.mubr.msk.bf16.mxu0 %vm680_vm2, %v3635_v14  ;;  %3475 = vmatprep.mubr.msk.bf16.mxu1 %vm680_vm2, %v3636_v15  ;;  %v3676_v55 = vld [vmem:[%s3850_s7 + $0x1c0] sm:$0xff]   ;;  %v3678_v57 = vld [vmem:[%s3850_s7 + $0x1c8] sm:$0xff]   ;;  %v3680_v59 = vld [vmem:[%s3850_s7 + $0x1d0] sm:$0xff]  }
  0x27   : > { %v3681_v60 = vld [vmem:[%s3850_s7 + $0xd8] sm:$0xff]   ;;  %v3683_v62 = vld [vmem:[%s3850_s7 + $0xe0] sm:$0xff]   ;;  %v3685_v0 = vld [vmem:[%s3850_s7 + $0xe8] sm:$0xff]  }
  0x28   : > { %v3682_v61 = vld [vmem:[%s3850_s7 + $0x1d8] sm:$0xff]   ;;  %v3684_v63 = vld [vmem:[%s3850_s7 + $0x1e0] sm:$0xff]   ;;  %v3686_v1 = vld [vmem:[%s3850_s7 + $0x1e8] sm:$0xff]  }
  0x29   : > { %v3687_v2 = vld [vmem:[%s3850_s7 + $0xf0] sm:$0xff]   ;;  %v3689_v4 = vld [vmem:[%s3850_s7 + $0xf8] sm:$0xff]   ;;  %v3983_v6 = vld [vmem:[%s4712_s2] ss:$0 sm:$0xff] }
  0x2a   : > { %v3688_v3 = vld [vmem:[%s3850_s7 + $0x1f0] sm:$0xff]   ;;  %v3690_v5 = vld [vmem:[%s3850_s7 + $0x1f8] ss:$0 sps:$4 sm:$0xff]   ;;  %v3989_v8 = vld [vmem:[%s4713_s3] ss:$0 sm:$0xff] }
  0x2d   : > { %3412 = vmatmul.mubr.msk.bf16.gmra.mxu0 %vm680_vm2, %v3637_v16  ;;  %3476 = vmatmul.mubr.msk.bf16.gmra.mxu1 %vm680_vm2, %v3638_v17 }
  0x2e   : > { %3415 = vmatprep.mubr.msk.bf16.mxu0 %vm680_vm2, %v3639_v18  ;;  %3479 = vmatprep.mubr.msk.bf16.mxu1 %vm680_vm2, %v3640_v19 }
  0x35   : > { %3416 = vmatmul.mubr.msk.bf16.gmra.mxu0 %vm680_vm2, %v3641_v20  ;;  %3480 = vmatmul.mubr.msk.bf16.gmra.mxu1 %vm680_vm2, %v3642_v21 }
  0x36   : > { %3419 = vmatprep.mubr.msk.bf16.mxu0 %vm680_vm2, %v3643_v22  ;;  %3483 = vmatprep.mubr.msk.bf16.mxu1 %vm680_vm2, %v3644_v23 }
  0x3d   : > { %3420 = vmatmul.mubr.msk.bf16.gmra.mxu0 %vm680_vm2, %v3645_v24  ;;  %3484 = vmatmul.mubr.msk.bf16.gmra.mxu1 %vm680_vm2, %v3646_v25 }
  0x3e   : > { %3423 = vmatprep.mubr.msk.bf16.mxu0 %vm680_vm2, %v3647_v26  ;;  %3487 = vmatprep.mubr.msk.bf16.mxu1 %vm680_vm2, %v3648_v27 }
  0x45   : > { %3424 = vmatmul.mubr.msk.bf16.gmra.mxu0 %vm680_vm2, %v3649_v28  ;;  %3488 = vmatmul.mubr.msk.bf16.gmra.mxu1 %vm680_vm2, %v3650_v29 }
  0x46   : > { %3427 = vmatprep.mubr.msk.bf16.mxu0 %vm680_vm2, %v3651_v30  ;;  %3491 = vmatprep.mubr.msk.bf16.mxu1 %vm680_vm2, %v3652_v31 }
  0x4d   : > { %3428 = vmatmul.mubr.msk.bf16.gmra.mxu0 %vm680_vm2, %v3653_v32  ;;  %3492 = vmatmul.mubr.msk.bf16.gmra.mxu1 %vm680_vm2, %v3654_v33 }
  0x4e   : > { %3431 = vmatprep.mubr.msk.bf16.mxu0 %vm680_vm2, %v3655_v34  ;;  %3495 = vmatprep.mubr.msk.bf16.mxu1 %vm680_vm2, %v3656_v35 }
  0x55   : > { %3432 = vmatmul.mubr.msk.bf16.gmra.mxu0 %vm680_vm2, %v3657_v36  ;;  %3496 = vmatmul.mubr.msk.bf16.gmra.mxu1 %vm680_vm2, %v3658_v37 }
  0x56   : > { %3435 = vmatprep.mubr.msk.bf16.mxu0 %vm680_vm2, %v3659_v38  ;;  %3499 = vmatprep.mubr.msk.bf16.mxu1 %vm680_vm2, %v3660_v39 }
  0x5d   : > { %3436 = vmatmul.mubr.msk.bf16.gmra.mxu0 %vm680_vm2, %v3661_v40  ;;  %3500 = vmatmul.mubr.msk.bf16.gmra.mxu1 %vm680_vm2, %v3662_v41 }
  0x5e   : > { %3439 = vmatprep.mubr.msk.bf16.mxu0 %vm680_vm2, %v3663_v42  ;;  %3503 = vmatprep.mubr.msk.bf16.mxu1 %vm680_vm2, %v3664_v43 }
  0x65   : > { %3440 = vmatmul.mubr.msk.bf16.gmra.mxu0 %vm680_vm2, %v3665_v44  ;;  %3504 = vmatmul.mubr.msk.bf16.gmra.mxu1 %vm680_vm2, %v3666_v45 }
  0x66   : > { %3443 = vmatprep.mubr.msk.bf16.mxu0 %vm680_vm2, %v3667_v46  ;;  %3507 = vmatprep.mubr.msk.bf16.mxu1 %vm680_vm2, %v3668_v47 }
  0x6d   : > { %3444 = vmatmul.mubr.msk.bf16.gmra.mxu0 %vm680_vm2, %v3669_v48  ;;  %3508 = vmatmul.mubr.msk.bf16.gmra.mxu1 %vm680_vm2, %v3670_v49 }
  0x6e   : > { %3447 = vmatprep.mubr.msk.bf16.mxu0 %vm680_vm2, %v3671_v50  ;;  %3511 = vmatprep.mubr.msk.bf16.mxu1 %vm680_vm2, %v3672_v51 }
  0x75   : > { %3448 = vmatmul.mubr.msk.bf16.gmra.mxu0 %vm680_vm2, %v3673_v52  ;;  %3512 = vmatmul.mubr.msk.bf16.gmra.mxu1 %vm680_vm2, %v3674_v53 }
  0x76   : > { %3451 = vmatprep.mubr.msk.bf16.mxu0 %vm680_vm2, %v3675_v54  ;;  %3515 = vmatprep.mubr.msk.bf16.mxu1 %vm680_vm2, %v3676_v55 }
  0x7d   : > { %3452 = vmatmul.mubr.msk.bf16.gmra.mxu0 %vm680_vm2, %v3677_v56  ;;  %3516 = vmatmul.mubr.msk.bf16.gmra.mxu1 %vm680_vm2, %v3678_v57 }
  0x7e   : > { %3455 = vmatprep.mubr.msk.bf16.mxu0 %vm680_vm2, %v3679_v58  ;;  %3519 = vmatprep.mubr.msk.bf16.mxu1 %vm680_vm2, %v3680_v59 }
  0x85   : > { %3456 = vmatmul.mubr.msk.bf16.gmra.mxu0 %vm680_vm2, %v3681_v60  ;;  %3520 = vmatmul.mubr.msk.bf16.gmra.mxu1 %vm680_vm2, %v3682_v61 }
  0x86   : > { %3459 = vmatprep.mubr.msk.bf16.mxu0 %vm680_vm2, %v3683_v62  ;;  %3523 = vmatprep.mubr.msk.bf16.mxu1 %vm680_vm2, %v3684_v63 }
  0x8d   : > { %3460 = vmatmul.mubr.msk.bf16.gmra.mxu0 %vm680_vm2, %v3685_v0  ;;  %3524 = vmatmul.mubr.msk.bf16.gmra.mxu1 %vm680_vm2, %v3686_v1 }
  0x8e   : > { %3463 = vmatprep.mubr.msk.bf16.mxu0 %vm680_vm2, %v3687_v2  ;;  %3527 = vmatprep.mubr.msk.bf16.mxu1 %vm680_vm2, %v3688_v3 }
  0x95   : > { %3464 = vmatmul.mubr.msk.bf16.gmra.mxu0 %vm680_vm2, %v3689_v4  ;;  %3528 = vmatmul.mubr.msk.bf16.gmra.mxu1 %vm680_vm2, %v3690_v5 }
  0xdd   : > { %v3405_v7 = vpop.f32.mrf.mxu0  ;;  %v3469_v10 = vpop.f32.mrf.mxu1 }
  0xde   : > { %v1433_v9 = vmul.f32 %v3405_v7, %v3983_v6  ;;  %v1497_v11 = vmul.f32 %v3469_v10, %v3983_v6 }
  0xdf   : > { %v914_v12 = vpop.f32.mrf.mxu0  ;;  %v1170_v15 = vpop.f32.mrf.mxu1 }
  0xe0   : > { %v1567_v13 = vadd.f32 %v3989_v8, %v1433_v9  ;;  %v1431_v14 = vmul.f32 %v3983_v6, %v914_v12  ;;  %v1631_v16 = vadd.f32 %v3989_v8, %v1497_v11  ;;  %v1495_v17 = vmul.f32 %v3983_v6, %v1170_v15 }
  0xe1   : > { %v3406_v18 = vpop.f32.mrf.mxu0  ;;  %v3470_v22 = vpop.f32.mrf.mxu1 }
  0xe2   : > { %v1694_v19 = vmax.f32 %v1567_v13, 0.0  ;;  %v1565_v20 = vadd.f32 %v3989_v8, %v1431_v14  ;;  %v1434_v21 = vmul.f32 %v3406_v18, %v3983_v6  ;;  %v1758_v23 = vmax.f32 %v1631_v16, 0.0 }
  0xe3   : > { %v1629_v24 = vadd.f32 %v3989_v8, %v1495_v17  ;;  %v1498_v25 = vmul.f32 %v3470_v22, %v3983_v6  ;;  %v917_v26 = vpop.f32.mrf.mxu0  ;;  %v1173_v31 = vpop.f32.mrf.mxu1 }
  0xe4   : > { %v3205_v27 = vpack.c.bf16 %v1694_v19, %v1694_v19  ;;  %v1692_v28 = vmax.f32 %v1565_v20, 0.0  ;;  %v1568_v29 = vadd.f32 %v3989_v8, %v1434_v21  ;;  %v1432_v30 = vmul.f32 %v3983_v6, %v917_v26 }
  0xe5   : > { %v3269_v32 = vpack.c.bf16 %v1758_v23, %v1758_v23  ;;  %v1756_v33 = vmax.f32 %v1629_v24, 0.0  ;;  %v1632_v34 = vadd.f32 %v3989_v8, %v1498_v25  ;;  %v1496_v35 = vmul.f32 %v3983_v6, %v1173_v31  ;;  %v3409_v36 = vpop.f32.mrf.mxu0  ;;  %v3473_v41 = vpop.f32.mrf.mxu1 }
  0xe6   : > { %2331 = vst.msk [vmem:[%s4005_s14 + $0x8] sm:$0xf] %vm2328_vm3, %v3205_v27  ;;  %v3203_v37 = vpack.c.bf16 %v1692_v28, %v1692_v28  ;;  %v1695_v38 = vmax.f32 %v1568_v29, 0.0  ;;  %v1566_v39 = vadd.f32 %v3989_v8, %v1432_v30  ;;  %v1437_v40 = vmul.f32 %v3409_v36, %v3983_v6 }
  0xe7   : > { %2395 = vst.msk [vmem:[%s4005_s14 + $0x108] sm:$0xf] %vm2328_vm3, %v3269_v32  ;;  %v3267_v42 = vpack.c.bf16 %v1756_v33, %v1756_v33  ;;  %v1759_v43 = vmax.f32 %v1632_v34, 0.0  ;;  %v1630_v44 = vadd.f32 %v3989_v8, %v1496_v35  ;;  %v1501_v45 = vmul.f32 %v3473_v41, %v3983_v6  ;;  %v930_v46 = vpop.f32.mrf.mxu0  ;;  %v1186_v51 = vpop.f32.mrf.mxu1 }
  0xe8   : > { %2329 = vst.msk [vmem:[%s4005_s14] sm:$0xf] %vm2328_vm3, %v3203_v37  ;;  %v3206_v47 = vpack.c.bf16 %v1695_v38, %v1695_v38  ;;  %v1693_v48 = vmax.f32 %v1566_v39, 0.0  ;;  %v1571_v49 = vadd.f32 %v3989_v8, %v1437_v40  ;;  %v1435_v50 = vmul.f32 %v3983_v6, %v930_v46 }
  0xe9   : > { %2393 = vst.msk [vmem:[%s4005_s14 + $0x100] sm:$0xf] %vm2328_vm3, %v3267_v42  ;;  %v3270_v52 = vpack.c.bf16 %v1759_v43, %v1759_v43  ;;  %v1757_v53 = vmax.f32 %v1630_v44, 0.0  ;;  %v1635_v54 = vadd.f32 %v3989_v8, %v1501_v45  ;;  %v1499_v55 = vmul.f32 %v3983_v6, %v1186_v51  ;;  %v3410_v56 = vpop.f32.mrf.mxu0  ;;  %v3474_v61 = vpop.f32.mrf.mxu1 }
  0xea   : > { %2332 = vst.msk [vmem:[%s4005_s14 + $0xc] sm:$0xf] %vm2328_vm3, %v3206_v47  ;;  %v3204_v57 = vpack.c.bf16 %v1693_v48, %v1693_v48  ;;  %v1698_v58 = vmax.f32 %v1571_v49, 0.0  ;;  %v1569_v59 = vadd.f32 %v3989_v8, %v1435_v50  ;;  %v1438_v60 = vmul.f32 %v3410_v56, %v3983_v6 }
  0xeb   : > { %2396 = vst.msk [vmem:[%s4005_s14 + $0x10c] sm:$0xf] %vm2328_vm3, %v3270_v52  ;;  %v3268_v62 = vpack.c.bf16 %v1757_v53, %v1757_v53  ;;  %v1762_v63 = vmax.f32 %v1635_v54, 0.0  ;;  %v1633_v0 = vadd.f32 %v3989_v8, %v1499_v55  ;;  %v1502_v1 = vmul.f32 %v3474_v61, %v3983_v6  ;;  %v933_v2 = vpop.f32.mrf.mxu0  ;;  %v1189_v9 = vpop.f32.mrf.mxu1 }
  0xec   : > { %2330 = vst.msk [vmem:[%s4005_s14 + $0x4] sm:$0xf] %vm2328_vm3, %v3204_v57  ;;  %v3209_v3 = vpack.c.bf16 %v1698_v58, %v1698_v58  ;;  %v1696_v4 = vmax.f32 %v1569_v59, 0.0  ;;  %v1572_v5 = vadd.f32 %v3989_v8, %v1438_v60  ;;  %v1436_v7 = vmul.f32 %v3983_v6, %v933_v2 }
  0xed   : > { %2394 = vst.msk [vmem:[%s4005_s14 + $0x104] sm:$0xf] %vm2328_vm3, %v3268_v62  ;;  %v3273_v10 = vpack.c.bf16 %v1762_v63, %v1762_v63  ;;  %v1760_v11 = vmax.f32 %v1633_v0, 0.0  ;;  %v1636_v12 = vadd.f32 %v3989_v8, %v1502_v1  ;;  %v1500_v13 = vmul.f32 %v3983_v6, %v1189_v9  ;;  %v3413_v14 = vpop.f32.mrf.mxu0  ;;  %v3477_v19 = vpop.f32.mrf.mxu1 }
  0xee   : > { %2335 = vst.msk [vmem:[%s4005_s14 + $0x18] sm:$0xf] %vm2328_vm3, %v3209_v3  ;;  %v3207_v15 = vpack.c.bf16 %v1696_v4, %v1696_v4  ;;  %v1699_v16 = vmax.f32 %v1572_v5, 0.0  ;;  %v1570_v17 = vadd.f32 %v3989_v8, %v1436_v7  ;;  %v1441_v18 = vmul.f32 %v3413_v14, %v3983_v6 }
  0xef   : > { %2399 = vst.msk [vmem:[%s4005_s14 + $0x118] sm:$0xf] %vm2328_vm3, %v3273_v10  ;;  %v3271_v20 = vpack.c.bf16 %v1760_v11, %v1760_v11  ;;  %v1763_v21 = vmax.f32 %v1636_v12, 0.0  ;;  %v1634_v22 = vadd.f32 %v3989_v8, %v1500_v13  ;;  %v1505_v23 = vmul.f32 %v3477_v19, %v3983_v6  ;;  %v946_v24 = vpop.f32.mrf.mxu0  ;;  %v1202_v29 = vpop.f32.mrf.mxu1 }
  0xf0   : > { %2333 = vst.msk [vmem:[%s4005_s14 + $0x10] sm:$0xf] %vm2328_vm3, %v3207_v15  ;;  %v3210_v25 = vpack.c.bf16 %v1699_v16, %v1699_v16  ;;  %v1697_v26 = vmax.f32 %v1570_v17, 0.0  ;;  %v1575_v27 = vadd.f32 %v3989_v8, %v1441_v18  ;;  %v1439_v28 = vmul.f32 %v3983_v6, %v946_v24 }
  0xf1   : > { %2397 = vst.msk [vmem:[%s4005_s14 + $0x110] sm:$0xf] %vm2328_vm3, %v3271_v20  ;;  %v3274_v30 = vpack.c.bf16 %v1763_v21, %v1763_v21  ;;  %v1761_v31 = vmax.f32 %v1634_v22, 0.0  ;;  %v1639_v32 = vadd.f32 %v3989_v8, %v1505_v23  ;;  %v1503_v33 = vmul.f32 %v3983_v6, %v1202_v29  ;;  %v3414_v34 = vpop.f32.mrf.mxu0  ;;  %v3478_v39 = vpop.f32.mrf.mxu1 }
  0xf2   : > { %2336 = vst.msk [vmem:[%s4005_s14 + $0x1c] sm:$0xf] %vm2328_vm3, %v3210_v25  ;;  %v3208_v35 = vpack.c.bf16 %v1697_v26, %v1697_v26  ;;  %v1702_v36 = vmax.f32 %v1575_v27, 0.0  ;;  %v1573_v37 = vadd.f32 %v3989_v8, %v1439_v28  ;;  %v1442_v38 = vmul.f32 %v3414_v34, %v3983_v6 }
  0xf3   : > { %2400 = vst.msk [vmem:[%s4005_s14 + $0x11c] sm:$0xf] %vm2328_vm3, %v3274_v30  ;;  %v3272_v40 = vpack.c.bf16 %v1761_v31, %v1761_v31  ;;  %v1766_v41 = vmax.f32 %v1639_v32, 0.0  ;;  %v1637_v42 = vadd.f32 %v3989_v8, %v1503_v33  ;;  %v1506_v43 = vmul.f32 %v3478_v39, %v3983_v6  ;;  %v949_v44 = vpop.f32.mrf.mxu0  ;;  %v1205_v49 = vpop.f32.mrf.mxu1 }
  0xf4   : > { %2334 = vst.msk [vmem:[%s4005_s14 + $0x14] sm:$0xf] %vm2328_vm3, %v3208_v35  ;;  %v3213_v45 = vpack.c.bf16 %v1702_v36, %v1702_v36  ;;  %v1700_v46 = vmax.f32 %v1573_v37, 0.0  ;;  %v1576_v47 = vadd.f32 %v3989_v8, %v1442_v38  ;;  %v1440_v48 = vmul.f32 %v3983_v6, %v949_v44 }
  0xf5   : > { %2398 = vst.msk [vmem:[%s4005_s14 + $0x114] sm:$0xf] %vm2328_vm3, %v3272_v40  ;;  %v3277_v50 = vpack.c.bf16 %v1766_v41, %v1766_v41  ;;  %v1764_v51 = vmax.f32 %v1637_v42, 0.0  ;;  %v1640_v52 = vadd.f32 %v3989_v8, %v1506_v43  ;;  %v1504_v53 = vmul.f32 %v3983_v6, %v1205_v49  ;;  %v3417_v54 = vpop.f32.mrf.mxu0  ;;  %v3481_v59 = vpop.f32.mrf.mxu1 }
  0xf6   : > { %2339 = vst.msk [vmem:[%s4005_s14 + $0x28] sm:$0xf] %vm2328_vm3, %v3213_v45  ;;  %v3211_v55 = vpack.c.bf16 %v1700_v46, %v1700_v46  ;;  %v1703_v56 = vmax.f32 %v1576_v47, 0.0  ;;  %v1574_v57 = vadd.f32 %v3989_v8, %v1440_v48  ;;  %v1445_v58 = vmul.f32 %v3417_v54, %v3983_v6 }
  0xf7   : > { %2403 = vst.msk [vmem:[%s4005_s14 + $0x128] sm:$0xf] %vm2328_vm3, %v3277_v50  ;;  %v3275_v60 = vpack.c.bf16 %v1764_v51, %v1764_v51  ;;  %v1767_v61 = vmax.f32 %v1640_v52, 0.0  ;;  %v1638_v62 = vadd.f32 %v3989_v8, %v1504_v53  ;;  %v1509_v63 = vmul.f32 %v3481_v59, %v3983_v6  ;;  %v962_v0 = vpop.f32.mrf.mxu0  ;;  %v1218_v5 = vpop.f32.mrf.mxu1 }
  0xf8   : > { %2337 = vst.msk [vmem:[%s4005_s14 + $0x20] sm:$0xf] %vm2328_vm3, %v3211_v55  ;;  %v3214_v1 = vpack.c.bf16 %v1703_v56, %v1703_v56  ;;  %v1701_v2 = vmax.f32 %v1574_v57, 0.0  ;;  %v1579_v3 = vadd.f32 %v3989_v8, %v1445_v58  ;;  %v1443_v4 = vmul.f32 %v3983_v6, %v962_v0 }
  0xf9   : > { %2401 = vst.msk [vmem:[%s4005_s14 + $0x120] sm:$0xf] %vm2328_vm3, %v3275_v60  ;;  %v3278_v7 = vpack.c.bf16 %v1767_v61, %v1767_v61  ;;  %v1765_v9 = vmax.f32 %v1638_v62, 0.0  ;;  %v1643_v10 = vadd.f32 %v3989_v8, %v1509_v63  ;;  %v1507_v11 = vmul.f32 %v3983_v6, %v1218_v5  ;;  %v3418_v12 = vpop.f32.mrf.mxu0  ;;  %v3482_v17 = vpop.f32.mrf.mxu1 }
  0xfa   : > { %2340 = vst.msk [vmem:[%s4005_s14 + $0x2c] sm:$0xf] %vm2328_vm3, %v3214_v1  ;;  %v3212_v13 = vpack.c.bf16 %v1701_v2, %v1701_v2  ;;  %v1706_v14 = vmax.f32 %v1579_v3, 0.0  ;;  %v1577_v15 = vadd.f32 %v3989_v8, %v1443_v4  ;;  %v1446_v16 = vmul.f32 %v3418_v12, %v3983_v6 }
  0xfb   : > { %2404 = vst.msk [vmem:[%s4005_s14 + $0x12c] sm:$0xf] %vm2328_vm3, %v3278_v7  ;;  %v3276_v18 = vpack.c.bf16 %v1765_v9, %v1765_v9  ;;  %v1770_v19 = vmax.f32 %v1643_v10, 0.0  ;;  %v1641_v20 = vadd.f32 %v3989_v8, %v1507_v11  ;;  %v1510_v21 = vmul.f32 %v3482_v17, %v3983_v6  ;;  %v965_v22 = vpop.f32.mrf.mxu0  ;;  %v1221_v27 = vpop.f32.mrf.mxu1 }
  0xfc   : > { %2338 = vst.msk [vmem:[%s4005_s14 + $0x24] sm:$0xf] %vm2328_vm3, %v3212_v13  ;;  %v3217_v23 = vpack.c.bf16 %v1706_v14, %v1706_v14  ;;  %v1704_v24 = vmax.f32 %v1577_v15, 0.0  ;;  %v1580_v25 = vadd.f32 %v3989_v8, %v1446_v16  ;;  %v1444_v26 = vmul.f32 %v3983_v6, %v965_v22 }
  0xfd   : > { %2402 = vst.msk [vmem:[%s4005_s14 + $0x124] sm:$0xf] %vm2328_vm3, %v3276_v18  ;;  %v3281_v28 = vpack.c.bf16 %v1770_v19, %v1770_v19  ;;  %v1768_v29 = vmax.f32 %v1641_v20, 0.0  ;;  %v1644_v30 = vadd.f32 %v3989_v8, %v1510_v21  ;;  %v1508_v31 = vmul.f32 %v3983_v6, %v1221_v27  ;;  %v3421_v32 = vpop.f32.mrf.mxu0  ;;  %v3485_v37 = vpop.f32.mrf.mxu1 }
  0xfe   : > { %2343 = vst.msk [vmem:[%s4005_s14 + $0x38] sm:$0xf] %vm2328_vm3, %v3217_v23  ;;  %v3215_v33 = vpack.c.bf16 %v1704_v24, %v1704_v24  ;;  %v1707_v34 = vmax.f32 %v1580_v25, 0.0  ;;  %v1578_v35 = vadd.f32 %v3989_v8, %v1444_v26  ;;  %v1449_v36 = vmul.f32 %v3421_v32, %v3983_v6 }
  0xff   : > { %2407 = vst.msk [vmem:[%s4005_s14 + $0x138] sm:$0xf] %vm2328_vm3, %v3281_v28  ;;  %v3279_v38 = vpack.c.bf16 %v1768_v29, %v1768_v29  ;;  %v1771_v39 = vmax.f32 %v1644_v30, 0.0  ;;  %v1642_v40 = vadd.f32 %v3989_v8, %v1508_v31  ;;  %v1513_v41 = vmul.f32 %v3485_v37, %v3983_v6  ;;  %v978_v42 = vpop.f32.mrf.mxu0  ;;  %v1234_v47 = vpop.f32.mrf.mxu1 }
 0x100   : > { %2341 = vst.msk [vmem:[%s4005_s14 + $0x30] sm:$0xf] %vm2328_vm3, %v3215_v33  ;;  %v3218_v43 = vpack.c.bf16 %v1707_v34, %v1707_v34  ;;  %v1705_v44 = vmax.f32 %v1578_v35, 0.0  ;;  %v1583_v45 = vadd.f32 %v3989_v8, %v1449_v36  ;;  %v1447_v46 = vmul.f32 %v3983_v6, %v978_v42 }
 0x101   : > { %2405 = vst.msk [vmem:[%s4005_s14 + $0x130] sm:$0xf] %vm2328_vm3, %v3279_v38  ;;  %v3282_v48 = vpack.c.bf16 %v1771_v39, %v1771_v39  ;;  %v1769_v49 = vmax.f32 %v1642_v40, 0.0  ;;  %v1647_v50 = vadd.f32 %v3989_v8, %v1513_v41  ;;  %v1511_v51 = vmul.f32 %v3983_v6, %v1234_v47  ;;  %v3422_v52 = vpop.f32.mrf.mxu0  ;;  %v3486_v57 = vpop.f32.mrf.mxu1 }
 0x102   : > { %2344 = vst.msk [vmem:[%s4005_s14 + $0x3c] sm:$0xf] %vm2328_vm3, %v3218_v43  ;;  %v3216_v53 = vpack.c.bf16 %v1705_v44, %v1705_v44  ;;  %v1710_v54 = vmax.f32 %v1583_v45, 0.0  ;;  %v1581_v55 = vadd.f32 %v3989_v8, %v1447_v46  ;;  %v1450_v56 = vmul.f32 %v3422_v52, %v3983_v6 }
 0x103   : > { %2408 = vst.msk [vmem:[%s4005_s14 + $0x13c] sm:$0xf] %vm2328_vm3, %v3282_v48  ;;  %v3280_v58 = vpack.c.bf16 %v1769_v49, %v1769_v49  ;;  %v1774_v59 = vmax.f32 %v1647_v50, 0.0  ;;  %v1645_v60 = vadd.f32 %v3989_v8, %v1511_v51  ;;  %v1514_v61 = vmul.f32 %v3486_v57, %v3983_v6  ;;  %v981_v62 = vpop.f32.mrf.mxu0  ;;  %v1237_v3 = vpop.f32.mrf.mxu1 }
 0x104   : > { %2342 = vst.msk [vmem:[%s4005_s14 + $0x34] sm:$0xf] %vm2328_vm3, %v3216_v53  ;;  %v3221_v63 = vpack.c.bf16 %v1710_v54, %v1710_v54  ;;  %v1708_v0 = vmax.f32 %v1581_v55, 0.0  ;;  %v1584_v1 = vadd.f32 %v3989_v8, %v1450_v56  ;;  %v1448_v2 = vmul.f32 %v3983_v6, %v981_v62 }
 0x105   : > { %2406 = vst.msk [vmem:[%s4005_s14 + $0x134] sm:$0xf] %vm2328_vm3, %v3280_v58  ;;  %v3285_v4 = vpack.c.bf16 %v1774_v59, %v1774_v59  ;;  %v1772_v5 = vmax.f32 %v1645_v60, 0.0  ;;  %v1648_v7 = vadd.f32 %v3989_v8, %v1514_v61  ;;  %v1512_v9 = vmul.f32 %v3983_v6, %v1237_v3  ;;  %v3425_v10 = vpop.f32.mrf.mxu0  ;;  %v3489_v15 = vpop.f32.mrf.mxu1 }
 0x106   : > { %2347 = vst.msk [vmem:[%s4005_s14 + $0x48] sm:$0xf] %vm2328_vm3, %v3221_v63  ;;  %v3219_v11 = vpack.c.bf16 %v1708_v0, %v1708_v0  ;;  %v1711_v12 = vmax.f32 %v1584_v1, 0.0  ;;  %v1582_v13 = vadd.f32 %v3989_v8, %v1448_v2  ;;  %v1453_v14 = vmul.f32 %v3425_v10, %v3983_v6 }
 0x107   : > { %2411 = vst.msk [vmem:[%s4005_s14 + $0x148] sm:$0xf] %vm2328_vm3, %v3285_v4  ;;  %v3283_v16 = vpack.c.bf16 %v1772_v5, %v1772_v5  ;;  %v1775_v17 = vmax.f32 %v1648_v7, 0.0  ;;  %v1646_v18 = vadd.f32 %v3989_v8, %v1512_v9  ;;  %v1517_v19 = vmul.f32 %v3489_v15, %v3983_v6  ;;  %v994_v20 = vpop.f32.mrf.mxu0  ;;  %v1250_v25 = vpop.f32.mrf.mxu1 }
 0x108   : > { %2345 = vst.msk [vmem:[%s4005_s14 + $0x40] sm:$0xf] %vm2328_vm3, %v3219_v11  ;;  %v3222_v21 = vpack.c.bf16 %v1711_v12, %v1711_v12  ;;  %v1709_v22 = vmax.f32 %v1582_v13, 0.0  ;;  %v1587_v23 = vadd.f32 %v3989_v8, %v1453_v14  ;;  %v1451_v24 = vmul.f32 %v3983_v6, %v994_v20 }
 0x109   : > { %2409 = vst.msk [vmem:[%s4005_s14 + $0x140] sm:$0xf] %vm2328_vm3, %v3283_v16  ;;  %v3286_v26 = vpack.c.bf16 %v1775_v17, %v1775_v17  ;;  %v1773_v27 = vmax.f32 %v1646_v18, 0.0  ;;  %v1651_v28 = vadd.f32 %v3989_v8, %v1517_v19  ;;  %v1515_v29 = vmul.f32 %v3983_v6, %v1250_v25  ;;  %v3426_v30 = vpop.f32.mrf.mxu0  ;;  %v3490_v35 = vpop.f32.mrf.mxu1 }
 0x10a   : > { %2348 = vst.msk [vmem:[%s4005_s14 + $0x4c] sm:$0xf] %vm2328_vm3, %v3222_v21  ;;  %v3220_v31 = vpack.c.bf16 %v1709_v22, %v1709_v22  ;;  %v1714_v32 = vmax.f32 %v1587_v23, 0.0  ;;  %v1585_v33 = vadd.f32 %v3989_v8, %v1451_v24  ;;  %v1454_v34 = vmul.f32 %v3426_v30, %v3983_v6 }
 0x10b   : > { %2412 = vst.msk [vmem:[%s4005_s14 + $0x14c] sm:$0xf] %vm2328_vm3, %v3286_v26  ;;  %v3284_v36 = vpack.c.bf16 %v1773_v27, %v1773_v27  ;;  %v1778_v37 = vmax.f32 %v1651_v28, 0.0  ;;  %v1649_v38 = vadd.f32 %v3989_v8, %v1515_v29  ;;  %v1518_v39 = vmul.f32 %v3490_v35, %v3983_v6  ;;  %v997_v40 = vpop.f32.mrf.mxu0  ;;  %v1253_v45 = vpop.f32.mrf.mxu1 }
 0x10c   : > { %2346 = vst.msk [vmem:[%s4005_s14 + $0x44] sm:$0xf] %vm2328_vm3, %v3220_v31  ;;  %v3225_v41 = vpack.c.bf16 %v1714_v32, %v1714_v32  ;;  %v1712_v42 = vmax.f32 %v1585_v33, 0.0  ;;  %v1588_v43 = vadd.f32 %v3989_v8, %v1454_v34  ;;  %v1452_v44 = vmul.f32 %v3983_v6, %v997_v40 }
 0x10d   : > { %2410 = vst.msk [vmem:[%s4005_s14 + $0x144] sm:$0xf] %vm2328_vm3, %v3284_v36  ;;  %v3289_v46 = vpack.c.bf16 %v1778_v37, %v1778_v37  ;;  %v1776_v47 = vmax.f32 %v1649_v38, 0.0  ;;  %v1652_v48 = vadd.f32 %v3989_v8, %v1518_v39  ;;  %v1516_v49 = vmul.f32 %v3983_v6, %v1253_v45  ;;  %v3429_v50 = vpop.f32.mrf.mxu0  ;;  %v3493_v55 = vpop.f32.mrf.mxu1 }
 0x10e   : > { %2351 = vst.msk [vmem:[%s4005_s14 + $0x58] sm:$0xf] %vm2328_vm3, %v3225_v41  ;;  %v3223_v51 = vpack.c.bf16 %v1712_v42, %v1712_v42  ;;  %v1715_v52 = vmax.f32 %v1588_v43, 0.0  ;;  %v1586_v53 = vadd.f32 %v3989_v8, %v1452_v44  ;;  %v1457_v54 = vmul.f32 %v3429_v50, %v3983_v6 }
 0x10f   : > { %2415 = vst.msk [vmem:[%s4005_s14 + $0x158] sm:$0xf] %vm2328_vm3, %v3289_v46  ;;  %v3287_v56 = vpack.c.bf16 %v1776_v47, %v1776_v47  ;;  %v1779_v57 = vmax.f32 %v1652_v48, 0.0  ;;  %v1650_v58 = vadd.f32 %v3989_v8, %v1516_v49  ;;  %v1521_v59 = vmul.f32 %v3493_v55, %v3983_v6  ;;  %v1010_v60 = vpop.f32.mrf.mxu0  ;;  %v1266_v1 = vpop.f32.mrf.mxu1 }
 0x110   : > { %2349 = vst.msk [vmem:[%s4005_s14 + $0x50] sm:$0xf] %vm2328_vm3, %v3223_v51  ;;  %v3226_v61 = vpack.c.bf16 %v1715_v52, %v1715_v52  ;;  %v1713_v62 = vmax.f32 %v1586_v53, 0.0  ;;  %v1591_v63 = vadd.f32 %v3989_v8, %v1457_v54  ;;  %v1455_v0 = vmul.f32 %v3983_v6, %v1010_v60 }
 0x111   : > { %2413 = vst.msk [vmem:[%s4005_s14 + $0x150] sm:$0xf] %vm2328_vm3, %v3287_v56  ;;  %v3290_v2 = vpack.c.bf16 %v1779_v57, %v1779_v57  ;;  %v1777_v3 = vmax.f32 %v1650_v58, 0.0  ;;  %v1655_v4 = vadd.f32 %v3989_v8, %v1521_v59  ;;  %v1519_v5 = vmul.f32 %v3983_v6, %v1266_v1  ;;  %v3430_v7 = vpop.f32.mrf.mxu0  ;;  %v3494_v13 = vpop.f32.mrf.mxu1 }
 0x112   : > { %2352 = vst.msk [vmem:[%s4005_s14 + $0x5c] sm:$0xf] %vm2328_vm3, %v3226_v61  ;;  %v3224_v9 = vpack.c.bf16 %v1713_v62, %v1713_v62  ;;  %v1718_v10 = vmax.f32 %v1591_v63, 0.0  ;;  %v1589_v11 = vadd.f32 %v3989_v8, %v1455_v0  ;;  %v1458_v12 = vmul.f32 %v3430_v7, %v3983_v6 }
 0x113   : > { %2416 = vst.msk [vmem:[%s4005_s14 + $0x15c] sm:$0xf] %vm2328_vm3, %v3290_v2  ;;  %v3288_v14 = vpack.c.bf16 %v1777_v3, %v1777_v3  ;;  %v1782_v15 = vmax.f32 %v1655_v4, 0.0  ;;  %v1653_v16 = vadd.f32 %v3989_v8, %v1519_v5  ;;  %v1522_v17 = vmul.f32 %v3494_v13, %v3983_v6  ;;  %v1013_v18 = vpop.f32.mrf.mxu0  ;;  %v1269_v23 = vpop.f32.mrf.mxu1 }
 0x114   : > { %2350 = vst.msk [vmem:[%s4005_s14 + $0x54] sm:$0xf] %vm2328_vm3, %v3224_v9  ;;  %v3229_v19 = vpack.c.bf16 %v1718_v10, %v1718_v10  ;;  %v1716_v20 = vmax.f32 %v1589_v11, 0.0  ;;  %v1592_v21 = vadd.f32 %v3989_v8, %v1458_v12  ;;  %v1456_v22 = vmul.f32 %v3983_v6, %v1013_v18 }
 0x115   : > { %2414 = vst.msk [vmem:[%s4005_s14 + $0x154] sm:$0xf] %vm2328_vm3, %v3288_v14  ;;  %v3293_v24 = vpack.c.bf16 %v1782_v15, %v1782_v15  ;;  %v1780_v25 = vmax.f32 %v1653_v16, 0.0  ;;  %v1656_v26 = vadd.f32 %v3989_v8, %v1522_v17  ;;  %v1520_v27 = vmul.f32 %v3983_v6, %v1269_v23  ;;  %v3433_v28 = vpop.f32.mrf.mxu0  ;;  %v3497_v33 = vpop.f32.mrf.mxu1 }
 0x116   : > { %2355 = vst.msk [vmem:[%s4005_s14 + $0x68] sm:$0xf] %vm2328_vm3, %v3229_v19  ;;  %v3227_v29 = vpack.c.bf16 %v1716_v20, %v1716_v20  ;;  %v1719_v30 = vmax.f32 %v1592_v21, 0.0  ;;  %v1590_v31 = vadd.f32 %v3989_v8, %v1456_v22  ;;  %v1461_v32 = vmul.f32 %v3433_v28, %v3983_v6 }
 0x117   : > { %2419 = vst.msk [vmem:[%s4005_s14 + $0x168] sm:$0xf] %vm2328_vm3, %v3293_v24  ;;  %v3291_v34 = vpack.c.bf16 %v1780_v25, %v1780_v25  ;;  %v1783_v35 = vmax.f32 %v1656_v26, 0.0  ;;  %v1654_v36 = vadd.f32 %v3989_v8, %v1520_v27  ;;  %v1525_v37 = vmul.f32 %v3497_v33, %v3983_v6  ;;  %v1026_v38 = vpop.f32.mrf.mxu0  ;;  %v1282_v43 = vpop.f32.mrf.mxu1 }
 0x118   : > { %2353 = vst.msk [vmem:[%s4005_s14 + $0x60] sm:$0xf] %vm2328_vm3, %v3227_v29  ;;  %v3230_v39 = vpack.c.bf16 %v1719_v30, %v1719_v30  ;;  %v1717_v40 = vmax.f32 %v1590_v31, 0.0  ;;  %v1595_v41 = vadd.f32 %v3989_v8, %v1461_v32  ;;  %v1459_v42 = vmul.f32 %v3983_v6, %v1026_v38 }
 0x119   : > { %2417 = vst.msk [vmem:[%s4005_s14 + $0x160] sm:$0xf] %vm2328_vm3, %v3291_v34  ;;  %v3294_v44 = vpack.c.bf16 %v1783_v35, %v1783_v35  ;;  %v1781_v45 = vmax.f32 %v1654_v36, 0.0  ;;  %v1659_v46 = vadd.f32 %v3989_v8, %v1525_v37  ;;  %v1523_v47 = vmul.f32 %v3983_v6, %v1282_v43  ;;  %v3434_v48 = vpop.f32.mrf.mxu0  ;;  %v3498_v53 = vpop.f32.mrf.mxu1 }
 0x11a   : > { %2356 = vst.msk [vmem:[%s4005_s14 + $0x6c] sm:$0xf] %vm2328_vm3, %v3230_v39  ;;  %v3228_v49 = vpack.c.bf16 %v1717_v40, %v1717_v40  ;;  %v1722_v50 = vmax.f32 %v1595_v41, 0.0  ;;  %v1593_v51 = vadd.f32 %v3989_v8, %v1459_v42  ;;  %v1462_v52 = vmul.f32 %v3434_v48, %v3983_v6 }
 0x11b   : > { %2420 = vst.msk [vmem:[%s4005_s14 + $0x16c] sm:$0xf] %vm2328_vm3, %v3294_v44  ;;  %v3292_v54 = vpack.c.bf16 %v1781_v45, %v1781_v45  ;;  %v1786_v55 = vmax.f32 %v1659_v46, 0.0  ;;  %v1657_v56 = vadd.f32 %v3989_v8, %v1523_v47  ;;  %v1526_v57 = vmul.f32 %v3498_v53, %v3983_v6  ;;  %v1029_v58 = vpop.f32.mrf.mxu0  ;;  %v1285_v63 = vpop.f32.mrf.mxu1 }
 0x11c   : > { %2354 = vst.msk [vmem:[%s4005_s14 + $0x64] sm:$0xf] %vm2328_vm3, %v3228_v49  ;;  %v3233_v59 = vpack.c.bf16 %v1722_v50, %v1722_v50  ;;  %v1720_v60 = vmax.f32 %v1593_v51, 0.0  ;;  %v1596_v61 = vadd.f32 %v3989_v8, %v1462_v52  ;;  %v1460_v62 = vmul.f32 %v3983_v6, %v1029_v58 }
 0x11d   : > { %2418 = vst.msk [vmem:[%s4005_s14 + $0x164] sm:$0xf] %vm2328_vm3, %v3292_v54  ;;  %v3297_v0 = vpack.c.bf16 %v1786_v55, %v1786_v55  ;;  %v1784_v1 = vmax.f32 %v1657_v56, 0.0  ;;  %v1660_v2 = vadd.f32 %v3989_v8, %v1526_v57  ;;  %v1524_v3 = vmul.f32 %v3983_v6, %v1285_v63  ;;  %v3437_v4 = vpop.f32.mrf.mxu0  ;;  %v3501_v11 = vpop.f32.mrf.mxu1 }
 0x11e   : > { %2359 = vst.msk [vmem:[%s4005_s14 + $0x78] sm:$0xf] %vm2328_vm3, %v3233_v59  ;;  %v3231_v5 = vpack.c.bf16 %v1720_v60, %v1720_v60  ;;  %v1723_v7 = vmax.f32 %v1596_v61, 0.0  ;;  %v1594_v9 = vadd.f32 %v3989_v8, %v1460_v62  ;;  %v1465_v10 = vmul.f32 %v3437_v4, %v3983_v6 }
 0x11f   : > { %2423 = vst.msk [vmem:[%s4005_s14 + $0x178] sm:$0xf] %vm2328_vm3, %v3297_v0  ;;  %v3295_v12 = vpack.c.bf16 %v1784_v1, %v1784_v1  ;;  %v1787_v13 = vmax.f32 %v1660_v2, 0.0  ;;  %v1658_v14 = vadd.f32 %v3989_v8, %v1524_v3  ;;  %v1529_v15 = vmul.f32 %v3501_v11, %v3983_v6  ;;  %v1042_v16 = vpop.f32.mrf.mxu0  ;;  %v1298_v21 = vpop.f32.mrf.mxu1 }
 0x120   : > { %2357 = vst.msk [vmem:[%s4005_s14 + $0x70] sm:$0xf] %vm2328_vm3, %v3231_v5  ;;  %v3234_v17 = vpack.c.bf16 %v1723_v7, %v1723_v7  ;;  %v1721_v18 = vmax.f32 %v1594_v9, 0.0  ;;  %v1599_v19 = vadd.f32 %v3989_v8, %v1465_v10  ;;  %v1463_v20 = vmul.f32 %v3983_v6, %v1042_v16 }
 0x121   : > { %2421 = vst.msk [vmem:[%s4005_s14 + $0x170] sm:$0xf] %vm2328_vm3, %v3295_v12  ;;  %v3298_v22 = vpack.c.bf16 %v1787_v13, %v1787_v13  ;;  %v1785_v23 = vmax.f32 %v1658_v14, 0.0  ;;  %v1663_v24 = vadd.f32 %v3989_v8, %v1529_v15  ;;  %v1527_v25 = vmul.f32 %v3983_v6, %v1298_v21  ;;  %v3438_v26 = vpop.f32.mrf.mxu0  ;;  %v3502_v31 = vpop.f32.mrf.mxu1 }
 0x122   : > { %2360 = vst.msk [vmem:[%s4005_s14 + $0x7c] sm:$0xf] %vm2328_vm3, %v3234_v17  ;;  %v3232_v27 = vpack.c.bf16 %v1721_v18, %v1721_v18  ;;  %v1726_v28 = vmax.f32 %v1599_v19, 0.0  ;;  %v1597_v29 = vadd.f32 %v3989_v8, %v1463_v20  ;;  %v1466_v30 = vmul.f32 %v3438_v26, %v3983_v6 }
 0x123   : > { %2424 = vst.msk [vmem:[%s4005_s14 + $0x17c] sm:$0xf] %vm2328_vm3, %v3298_v22  ;;  %v3296_v32 = vpack.c.bf16 %v1785_v23, %v1785_v23  ;;  %v1790_v33 = vmax.f32 %v1663_v24, 0.0  ;;  %v1661_v34 = vadd.f32 %v3989_v8, %v1527_v25  ;;  %v1530_v35 = vmul.f32 %v3502_v31, %v3983_v6  ;;  %v1045_v36 = vpop.f32.mrf.mxu0  ;;  %v1301_v41 = vpop.f32.mrf.mxu1 }
 0x124   : > { %2358 = vst.msk [vmem:[%s4005_s14 + $0x74] sm:$0xf] %vm2328_vm3, %v3232_v27  ;;  %v3237_v37 = vpack.c.bf16 %v1726_v28, %v1726_v28  ;;  %v1724_v38 = vmax.f32 %v1597_v29, 0.0  ;;  %v1600_v39 = vadd.f32 %v3989_v8, %v1466_v30  ;;  %v1464_v40 = vmul.f32 %v3983_v6, %v1045_v36 }
 0x125   : > { %2422 = vst.msk [vmem:[%s4005_s14 + $0x174] sm:$0xf] %vm2328_vm3, %v3296_v32  ;;  %v3301_v42 = vpack.c.bf16 %v1790_v33, %v1790_v33  ;;  %v1788_v43 = vmax.f32 %v1661_v34, 0.0  ;;  %v1664_v44 = vadd.f32 %v3989_v8, %v1530_v35  ;;  %v1528_v45 = vmul.f32 %v3983_v6, %v1301_v41  ;;  %v3441_v46 = vpop.f32.mrf.mxu0  ;;  %v3505_v51 = vpop.f32.mrf.mxu1 }
 0x126   : > { %2363 = vst.msk [vmem:[%s4005_s14 + $0x88] sm:$0xf] %vm2328_vm3, %v3237_v37  ;;  %v3235_v47 = vpack.c.bf16 %v1724_v38, %v1724_v38  ;;  %v1727_v48 = vmax.f32 %v1600_v39, 0.0  ;;  %v1598_v49 = vadd.f32 %v3989_v8, %v1464_v40  ;;  %v1469_v50 = vmul.f32 %v3441_v46, %v3983_v6 }
 0x127   : > { %2427 = vst.msk [vmem:[%s4005_s14 + $0x188] sm:$0xf] %vm2328_vm3, %v3301_v42  ;;  %v3299_v52 = vpack.c.bf16 %v1788_v43, %v1788_v43  ;;  %v1791_v53 = vmax.f32 %v1664_v44, 0.0  ;;  %v1662_v54 = vadd.f32 %v3989_v8, %v1528_v45  ;;  %v1533_v55 = vmul.f32 %v3505_v51, %v3983_v6  ;;  %v1058_v56 = vpop.f32.mrf.mxu0  ;;  %v1314_v61 = vpop.f32.mrf.mxu1 }
 0x128   : > { %2361 = vst.msk [vmem:[%s4005_s14 + $0x80] sm:$0xf] %vm2328_vm3, %v3235_v47  ;;  %v3238_v57 = vpack.c.bf16 %v1727_v48, %v1727_v48  ;;  %v1725_v58 = vmax.f32 %v1598_v49, 0.0  ;;  %v1603_v59 = vadd.f32 %v3989_v8, %v1469_v50  ;;  %v1467_v60 = vmul.f32 %v3983_v6, %v1058_v56 }
 0x129   : > { %2425 = vst.msk [vmem:[%s4005_s14 + $0x180] sm:$0xf] %vm2328_vm3, %v3299_v52  ;;  %v3302_v62 = vpack.c.bf16 %v1791_v53, %v1791_v53  ;;  %v1789_v63 = vmax.f32 %v1662_v54, 0.0  ;;  %v1667_v0 = vadd.f32 %v3989_v8, %v1533_v55  ;;  %v1531_v1 = vmul.f32 %v3983_v6, %v1314_v61  ;;  %v3442_v2 = vpop.f32.mrf.mxu0  ;;  %v3506_v9 = vpop.f32.mrf.mxu1 }
 0x12a   : > { %2364 = vst.msk [vmem:[%s4005_s14 + $0x8c] sm:$0xf] %vm2328_vm3, %v3238_v57  ;;  %v3236_v3 = vpack.c.bf16 %v1725_v58, %v1725_v58  ;;  %v1730_v4 = vmax.f32 %v1603_v59, 0.0  ;;  %v1601_v5 = vadd.f32 %v3989_v8, %v1467_v60  ;;  %v1470_v7 = vmul.f32 %v3442_v2, %v3983_v6 }
 0x12b   : > { %2428 = vst.msk [vmem:[%s4005_s14 + $0x18c] sm:$0xf] %vm2328_vm3, %v3302_v62  ;;  %v3300_v10 = vpack.c.bf16 %v1789_v63, %v1789_v63  ;;  %v1794_v11 = vmax.f32 %v1667_v0, 0.0  ;;  %v1665_v12 = vadd.f32 %v3989_v8, %v1531_v1  ;;  %v1534_v13 = vmul.f32 %v3506_v9, %v3983_v6  ;;  %v1061_v14 = vpop.f32.mrf.mxu0  ;;  %v1317_v19 = vpop.f32.mrf.mxu1  ;;  %v4329_v63 = vld [vmem:[%s4712_s2] ss:$0 sm:$0xff] }
 0x12c   : > { %2362 = vst.msk [vmem:[%s4005_s14 + $0x84] sm:$0xf] %vm2328_vm3, %v3236_v3  ;;  %v3241_v15 = vpack.c.bf16 %v1730_v4, %v1730_v4  ;;  %v1728_v16 = vmax.f32 %v1601_v5, 0.0  ;;  %v1604_v17 = vadd.f32 %v3989_v8, %v1470_v7  ;;  %v1468_v18 = vmul.f32 %v3983_v6, %v1061_v14  ;;  %v4337_v3 = vld [vmem:[%s4713_s3] ss:$0 sm:$0xff] }
 0x12d   : > { %2426 = vst.msk [vmem:[%s4005_s14 + $0x184] sm:$0xf] %vm2328_vm3, %v3300_v10  ;;  %v3305_v20 = vpack.c.bf16 %v1794_v11, %v1794_v11  ;;  %v1792_v21 = vmax.f32 %v1665_v12, 0.0  ;;  %v1668_v22 = vadd.f32 %v3989_v8, %v1534_v13  ;;  %v1532_v23 = vmul.f32 %v3983_v6, %v1317_v19  ;;  %v3445_v24 = vpop.f32.mrf.mxu0  ;;  %v3509_v29 = vpop.f32.mrf.mxu1 }
 0x12e   : > { %2367 = vst.msk [vmem:[%s4005_s14 + $0x98] sm:$0xf] %vm2328_vm3, %v3241_v15  ;;  %v3239_v25 = vpack.c.bf16 %v1728_v16, %v1728_v16  ;;  %v1731_v26 = vmax.f32 %v1604_v17, 0.0  ;;  %v1602_v27 = vadd.f32 %v3989_v8, %v1468_v18  ;;  %v1473_v28 = vmul.f32 %v3445_v24, %v3983_v6 }
 0x12f   : > { %2431 = vst.msk [vmem:[%s4005_s14 + $0x198] sm:$0xf] %vm2328_vm3, %v3305_v20  ;;  %v3303_v30 = vpack.c.bf16 %v1792_v21, %v1792_v21  ;;  %v1795_v31 = vmax.f32 %v1668_v22, 0.0  ;;  %v1666_v32 = vadd.f32 %v3989_v8, %v1532_v23  ;;  %v1537_v33 = vmul.f32 %v3509_v29, %v3983_v6  ;;  %v1074_v34 = vpop.f32.mrf.mxu0  ;;  %v1330_v39 = vpop.f32.mrf.mxu1 }
 0x130   : > { %2365 = vst.msk [vmem:[%s4005_s14 + $0x90] sm:$0xf] %vm2328_vm3, %v3239_v25  ;;  %v3242_v35 = vpack.c.bf16 %v1731_v26, %v1731_v26  ;;  %v1729_v36 = vmax.f32 %v1602_v27, 0.0  ;;  %v1607_v37 = vadd.f32 %v3989_v8, %v1473_v28  ;;  %v1471_v38 = vmul.f32 %v3983_v6, %v1074_v34 }
 0x131   : > { %2429 = vst.msk [vmem:[%s4005_s14 + $0x190] sm:$0xf] %vm2328_vm3, %v3303_v30  ;;  %v3306_v40 = vpack.c.bf16 %v1795_v31, %v1795_v31  ;;  %v1793_v41 = vmax.f32 %v1666_v32, 0.0  ;;  %v1671_v42 = vadd.f32 %v3989_v8, %v1537_v33  ;;  %v1535_v43 = vmul.f32 %v3983_v6, %v1330_v39  ;;  %v3446_v44 = vpop.f32.mrf.mxu0  ;;  %v3510_v49 = vpop.f32.mrf.mxu1 }
 0x132   : > { %2368 = vst.msk [vmem:[%s4005_s14 + $0x9c] sm:$0xf] %vm2328_vm3, %v3242_v35  ;;  %v3240_v45 = vpack.c.bf16 %v1729_v36, %v1729_v36  ;;  %v1734_v46 = vmax.f32 %v1607_v37, 0.0  ;;  %v1605_v47 = vadd.f32 %v3989_v8, %v1471_v38  ;;  %v1474_v48 = vmul.f32 %v3446_v44, %v3983_v6 }
 0x133   : > { %2432 = vst.msk [vmem:[%s4005_s14 + $0x19c] sm:$0xf] %vm2328_vm3, %v3306_v40  ;;  %v3304_v50 = vpack.c.bf16 %v1793_v41, %v1793_v41  ;;  %v1798_v51 = vmax.f32 %v1671_v42, 0.0  ;;  %v1669_v52 = vadd.f32 %v3989_v8, %v1535_v43  ;;  %v1538_v53 = vmul.f32 %v3510_v49, %v3983_v6  ;;  %v1077_v54 = vpop.f32.mrf.mxu0  ;;  %v1333_v59 = vpop.f32.mrf.mxu1 }
 0x134   : > { %2366 = vst.msk [vmem:[%s4005_s14 + $0x94] sm:$0xf] %vm2328_vm3, %v3240_v45  ;;  %v3245_v55 = vpack.c.bf16 %v1734_v46, %v1734_v46  ;;  %v1732_v56 = vmax.f32 %v1605_v47, 0.0  ;;  %v1608_v57 = vadd.f32 %v3989_v8, %v1474_v48  ;;  %v1472_v58 = vmul.f32 %v3983_v6, %v1077_v54 }
 0x135   : > { %2430 = vst.msk [vmem:[%s4005_s14 + $0x194] sm:$0xf] %vm2328_vm3, %v3304_v50  ;;  %v3309_v60 = vpack.c.bf16 %v1798_v51, %v1798_v51  ;;  %v1796_v61 = vmax.f32 %v1669_v52, 0.0  ;;  %v1672_v62 = vadd.f32 %v3989_v8, %v1538_v53  ;;  %v1536_v0 = vmul.f32 %v4329_v63, %v1333_v59  ;;  %v3449_v1 = vpop.f32.mrf.mxu0  ;;  %v3513_v5 = vpop.f32.mrf.mxu1 }
 0x136   : > { %2371 = vst.msk [vmem:[%s4005_s14 + $0xa8] sm:$0xf] %vm2328_vm3, %v3245_v55  ;;  %v3243_v6 = vpack.c.bf16 %v1732_v56, %v1732_v56  ;;  %v1735_v2 = vmax.f32 %v1608_v57, 0.0  ;;  %v1606_v8 = vadd.f32 %v4337_v3, %v1472_v58  ;;  %v1477_v4 = vmul.f32 %v4329_v63, %v3449_v1 }
 0x137   : > { %2435 = vst.msk [vmem:[%s4005_s14 + $0x1a8] sm:$0xf] %vm2328_vm3, %v3309_v60  ;;  %v3307_v7 = vpack.c.bf16 %v1796_v61, %v1796_v61  ;;  %v1799_v9 = vmax.f32 %v1672_v62, 0.0  ;;  %v1670_v10 = vadd.f32 %v4337_v3, %v1536_v0  ;;  %v1541_v11 = vmul.f32 %v4329_v63, %v3513_v5  ;;  %v1090_v12 = vpop.f32.mrf.mxu0  ;;  %v1346_v17 = vpop.f32.mrf.mxu1 }
 0x138   : > { %2369 = vst.msk [vmem:[%s4005_s14 + $0xa0] sm:$0xf] %vm2328_vm3, %v3243_v6  ;;  %v3246_v13 = vpack.c.bf16 %v1735_v2, %v1735_v2  ;;  %v1733_v14 = vmax.f32 %v1606_v8, 0.0  ;;  %v1611_v15 = vadd.f32 %v4337_v3, %v1477_v4  ;;  %v1475_v16 = vmul.f32 %v4329_v63, %v1090_v12 }
 0x139   : > { %2433 = vst.msk [vmem:[%s4005_s14 + $0x1a0] sm:$0xf] %vm2328_vm3, %v3307_v7  ;;  %v3310_v18 = vpack.c.bf16 %v1799_v9, %v1799_v9  ;;  %v1797_v19 = vmax.f32 %v1670_v10, 0.0  ;;  %v1675_v20 = vadd.f32 %v4337_v3, %v1541_v11  ;;  %v1539_v21 = vmul.f32 %v4329_v63, %v1346_v17  ;;  %v3450_v22 = vpop.f32.mrf.mxu0  ;;  %v3514_v27 = vpop.f32.mrf.mxu1 }
 0x13a   : > { %2372 = vst.msk [vmem:[%s4005_s14 + $0xac] sm:$0xf] %vm2328_vm3, %v3246_v13  ;;  %v3244_v23 = vpack.c.bf16 %v1733_v14, %v1733_v14  ;;  %v1738_v24 = vmax.f32 %v1611_v15, 0.0  ;;  %v1609_v25 = vadd.f32 %v4337_v3, %v1475_v16  ;;  %v1478_v26 = vmul.f32 %v4329_v63, %v3450_v22 }
 0x13b   : > { %2436 = vst.msk [vmem:[%s4005_s14 + $0x1ac] sm:$0xf] %vm2328_vm3, %v3310_v18  ;;  %v3308_v28 = vpack.c.bf16 %v1797_v19, %v1797_v19  ;;  %v1802_v29 = vmax.f32 %v1675_v20, 0.0  ;;  %v1673_v30 = vadd.f32 %v4337_v3, %v1539_v21  ;;  %v1542_v31 = vmul.f32 %v4329_v63, %v3514_v27  ;;  %v1093_v32 = vpop.f32.mrf.mxu0  ;;  %v1349_v37 = vpop.f32.mrf.mxu1 }
 0x13c   : > { %2370 = vst.msk [vmem:[%s4005_s14 + $0xa4] sm:$0xf] %vm2328_vm3, %v3244_v23  ;;  %v3249_v33 = vpack.c.bf16 %v1738_v24, %v1738_v24  ;;  %v1736_v34 = vmax.f32 %v1609_v25, 0.0  ;;  %v1612_v35 = vadd.f32 %v4337_v3, %v1478_v26  ;;  %v1476_v36 = vmul.f32 %v4329_v63, %v1093_v32 }
 0x13d   : > { %2434 = vst.msk [vmem:[%s4005_s14 + $0x1a4] sm:$0xf] %vm2328_vm3, %v3308_v28  ;;  %v3313_v38 = vpack.c.bf16 %v1802_v29, %v1802_v29  ;;  %v1800_v39 = vmax.f32 %v1673_v30, 0.0  ;;  %v1676_v40 = vadd.f32 %v4337_v3, %v1542_v31  ;;  %v1540_v41 = vmul.f32 %v4329_v63, %v1349_v37  ;;  %v3453_v42 = vpop.f32.mrf.mxu0  ;;  %v3517_v47 = vpop.f32.mrf.mxu1 }
 0x13e   : > { %2375 = vst.msk [vmem:[%s4005_s14 + $0xb8] sm:$0xf] %vm2328_vm3, %v3249_v33  ;;  %v3247_v43 = vpack.c.bf16 %v1736_v34, %v1736_v34  ;;  %v1739_v44 = vmax.f32 %v1612_v35, 0.0  ;;  %v1610_v45 = vadd.f32 %v4337_v3, %v1476_v36  ;;  %v1481_v46 = vmul.f32 %v4329_v63, %v3453_v42 }
 0x13f   : > { %2439 = vst.msk [vmem:[%s4005_s14 + $0x1b8] sm:$0xf] %vm2328_vm3, %v3313_v38  ;;  %v3311_v48 = vpack.c.bf16 %v1800_v39, %v1800_v39  ;;  %v1803_v49 = vmax.f32 %v1676_v40, 0.0  ;;  %v1674_v50 = vadd.f32 %v4337_v3, %v1540_v41  ;;  %v1545_v51 = vmul.f32 %v4329_v63, %v3517_v47  ;;  %v1106_v52 = vpop.f32.mrf.mxu0  ;;  %v1362_v57 = vpop.f32.mrf.mxu1 }
 0x140   : > { %2373 = vst.msk [vmem:[%s4005_s14 + $0xb0] sm:$0xf] %vm2328_vm3, %v3247_v43  ;;  %v3250_v53 = vpack.c.bf16 %v1739_v44, %v1739_v44  ;;  %v1737_v54 = vmax.f32 %v1610_v45, 0.0  ;;  %v1615_v55 = vadd.f32 %v4337_v3, %v1481_v46  ;;  %v1479_v56 = vmul.f32 %v4329_v63, %v1106_v52 }
 0x141   : > { %2437 = vst.msk [vmem:[%s4005_s14 + $0x1b0] sm:$0xf] %vm2328_vm3, %v3311_v48  ;;  %v3314_v58 = vpack.c.bf16 %v1803_v49, %v1803_v49  ;;  %v1801_v59 = vmax.f32 %v1674_v50, 0.0  ;;  %v1679_v60 = vadd.f32 %v4337_v3, %v1545_v51  ;;  %v1543_v61 = vmul.f32 %v4329_v63, %v1362_v57  ;;  %v3454_v62 = vpop.f32.mrf.mxu0  ;;  %v3518_v8 = vpop.f32.mrf.mxu1 }
 0x142   : > { %2376 = vst.msk [vmem:[%s4005_s14 + $0xbc] sm:$0xf] %vm2328_vm3, %v3250_v53  ;;  %v3248_v0 = vpack.c.bf16 %v1737_v54, %v1737_v54  ;;  %v1742_v1 = vmax.f32 %v1615_v55, 0.0  ;;  %v1613_v6 = vadd.f32 %v4337_v3, %v1479_v56  ;;  %v1482_v2 = vmul.f32 %v4329_v63, %v3454_v62 }
 0x143   : > { %2440 = vst.msk [vmem:[%s4005_s14 + $0x1bc] sm:$0xf] %vm2328_vm3, %v3314_v58  ;;  %v3312_v4 = vpack.c.bf16 %v1801_v59, %v1801_v59  ;;  %v1806_v5 = vmax.f32 %v1679_v60, 0.0  ;;  %v1677_v7 = vadd.f32 %v4337_v3, %v1543_v61  ;;  %v1546_v9 = vmul.f32 %v4329_v63, %v3518_v8  ;;  %v1109_v10 = vpop.f32.mrf.mxu0  ;;  %v1365_v15 = vpop.f32.mrf.mxu1 }
 0x144   : > { %2374 = vst.msk [vmem:[%s4005_s14 + $0xb4] sm:$0xf] %vm2328_vm3, %v3248_v0  ;;  %v3253_v11 = vpack.c.bf16 %v1742_v1, %v1742_v1  ;;  %v1740_v12 = vmax.f32 %v1613_v6, 0.0  ;;  %v1616_v13 = vadd.f32 %v4337_v3, %v1482_v2  ;;  %v1480_v14 = vmul.f32 %v4329_v63, %v1109_v10 }
 0x145   : > { %2438 = vst.msk [vmem:[%s4005_s14 + $0x1b4] sm:$0xf] %vm2328_vm3, %v3312_v4  ;;  %v3317_v16 = vpack.c.bf16 %v1806_v5, %v1806_v5  ;;  %v1804_v17 = vmax.f32 %v1677_v7, 0.0  ;;  %v1680_v18 = vadd.f32 %v4337_v3, %v1546_v9  ;;  %v1544_v19 = vmul.f32 %v4329_v63, %v1365_v15  ;;  %v3457_v20 = vpop.f32.mrf.mxu0  ;;  %v3521_v25 = vpop.f32.mrf.mxu1 }
 0x146   : > { %2379 = vst.msk [vmem:[%s4005_s14 + $0xc8] sm:$0xf] %vm2328_vm3, %v3253_v11  ;;  %v3251_v21 = vpack.c.bf16 %v1740_v12, %v1740_v12  ;;  %v1743_v22 = vmax.f32 %v1616_v13, 0.0  ;;  %v1614_v23 = vadd.f32 %v4337_v3, %v1480_v14  ;;  %v1485_v24 = vmul.f32 %v4329_v63, %v3457_v20 }
 0x147   : > { %2443 = vst.msk [vmem:[%s4005_s14 + $0x1c8] sm:$0xf] %vm2328_vm3, %v3317_v16  ;;  %v3315_v26 = vpack.c.bf16 %v1804_v17, %v1804_v17  ;;  %v1807_v27 = vmax.f32 %v1680_v18, 0.0  ;;  %v1678_v28 = vadd.f32 %v4337_v3, %v1544_v19  ;;  %v1549_v29 = vmul.f32 %v4329_v63, %v3521_v25  ;;  %v1122_v30 = vpop.f32.mrf.mxu0  ;;  %v1378_v35 = vpop.f32.mrf.mxu1 }
 0x148   : > { %2377 = vst.msk [vmem:[%s4005_s14 + $0xc0] sm:$0xf] %vm2328_vm3, %v3251_v21  ;;  %v3254_v31 = vpack.c.bf16 %v1743_v22, %v1743_v22  ;;  %v1741_v32 = vmax.f32 %v1614_v23, 0.0  ;;  %v1619_v33 = vadd.f32 %v4337_v3, %v1485_v24  ;;  %v1483_v34 = vmul.f32 %v4329_v63, %v1122_v30 }
 0x149   : > { %2441 = vst.msk [vmem:[%s4005_s14 + $0x1c0] sm:$0xf] %vm2328_vm3, %v3315_v26  ;;  %v3318_v36 = vpack.c.bf16 %v1807_v27, %v1807_v27  ;;  %v1805_v37 = vmax.f32 %v1678_v28, 0.0  ;;  %v1683_v38 = vadd.f32 %v4337_v3, %v1549_v29  ;;  %v1547_v39 = vmul.f32 %v4329_v63, %v1378_v35  ;;  %v3458_v40 = vpop.f32.mrf.mxu0  ;;  %v3522_v45 = vpop.f32.mrf.mxu1 }
 0x14a   : > { %2380 = vst.msk [vmem:[%s4005_s14 + $0xcc] sm:$0xf] %vm2328_vm3, %v3254_v31  ;;  %v3252_v41 = vpack.c.bf16 %v1741_v32, %v1741_v32  ;;  %v1746_v42 = vmax.f32 %v1619_v33, 0.0  ;;  %v1617_v43 = vadd.f32 %v4337_v3, %v1483_v34  ;;  %v1486_v44 = vmul.f32 %v4329_v63, %v3458_v40 }
 0x14b   : > { %2444 = vst.msk [vmem:[%s4005_s14 + $0x1cc] sm:$0xf] %vm2328_vm3, %v3318_v36  ;;  %v3316_v46 = vpack.c.bf16 %v1805_v37, %v1805_v37  ;;  %v1810_v47 = vmax.f32 %v1683_v38, 0.0  ;;  %v1681_v48 = vadd.f32 %v4337_v3, %v1547_v39  ;;  %v1550_v49 = vmul.f32 %v4329_v63, %v3522_v45  ;;  %v1125_v50 = vpop.f32.mrf.mxu0  ;;  %v1381_v55 = vpop.f32.mrf.mxu1 }
 0x14c   : > { %2378 = vst.msk [vmem:[%s4005_s14 + $0xc4] sm:$0xf] %vm2328_vm3, %v3252_v41  ;;  %v3257_v51 = vpack.c.bf16 %v1746_v42, %v1746_v42  ;;  %v1744_v52 = vmax.f32 %v1617_v43, 0.0  ;;  %v1620_v53 = vadd.f32 %v4337_v3, %v1486_v44  ;;  %v1484_v54 = vmul.f32 %v4329_v63, %v1125_v50 }
 0x14d   : > { %2442 = vst.msk [vmem:[%s4005_s14 + $0x1c4] sm:$0xf] %vm2328_vm3, %v3316_v46  ;;  %v3321_v56 = vpack.c.bf16 %v1810_v47, %v1810_v47  ;;  %v1808_v57 = vmax.f32 %v1681_v48, 0.0  ;;  %v1684_v58 = vadd.f32 %v4337_v3, %v1550_v49  ;;  %v1548_v59 = vmul.f32 %v4329_v63, %v1381_v55  ;;  %v3461_v60 = vpop.f32.mrf.mxu0  ;;  %v3525_v6 = vpop.f32.mrf.mxu1 }
 0x14e   : > { %2383 = vst.msk [vmem:[%s4005_s14 + $0xd8] sm:$0xf] %vm2328_vm3, %v3257_v51  ;;  %v3255_v61 = vpack.c.bf16 %v1744_v52, %v1744_v52  ;;  %v1747_v62 = vmax.f32 %v1620_v53, 0.0  ;;  %v1618_v0 = vadd.f32 %v4337_v3, %v1484_v54  ;;  %v1489_v1 = vmul.f32 %v4329_v63, %v3461_v60 }
 0x14f   : > { %2447 = vst.msk [vmem:[%s4005_s14 + $0x1d8] sm:$0xf] %vm2328_vm3, %v3321_v56  ;;  %v3319_v2 = vpack.c.bf16 %v1808_v57, %v1808_v57  ;;  %v1811_v8 = vmax.f32 %v1684_v58, 0.0  ;;  %v1682_v4 = vadd.f32 %v4337_v3, %v1548_v59  ;;  %v1553_v5 = vmul.f32 %v4329_v63, %v3525_v6  ;;  %v1138_v7 = vpop.f32.mrf.mxu0  ;;  %v1394_v13 = vpop.f32.mrf.mxu1 }
 0x150   : > { %2381 = vst.msk [vmem:[%s4005_s14 + $0xd0] sm:$0xf] %vm2328_vm3, %v3255_v61  ;;  %v3258_v9 = vpack.c.bf16 %v1747_v62, %v1747_v62  ;;  %v1745_v10 = vmax.f32 %v1618_v0, 0.0  ;;  %v1623_v11 = vadd.f32 %v4337_v3, %v1489_v1  ;;  %v1487_v12 = vmul.f32 %v4329_v63, %v1138_v7 }
 0x151   : > { %2445 = vst.msk [vmem:[%s4005_s14 + $0x1d0] sm:$0xf] %vm2328_vm3, %v3319_v2  ;;  %v3322_v14 = vpack.c.bf16 %v1811_v8, %v1811_v8  ;;  %v1809_v15 = vmax.f32 %v1682_v4, 0.0  ;;  %v1687_v16 = vadd.f32 %v4337_v3, %v1553_v5  ;;  %v1551_v17 = vmul.f32 %v4329_v63, %v1394_v13  ;;  %v3462_v18 = vpop.f32.mrf.mxu0  ;;  %v3526_v23 = vpop.f32.mrf.mxu1 }
 0x152   : > { %2384 = vst.msk [vmem:[%s4005_s14 + $0xdc] sm:$0xf] %vm2328_vm3, %v3258_v9  ;;  %v3256_v19 = vpack.c.bf16 %v1745_v10, %v1745_v10  ;;  %v1750_v20 = vmax.f32 %v1623_v11, 0.0  ;;  %v1621_v21 = vadd.f32 %v4337_v3, %v1487_v12  ;;  %v1490_v22 = vmul.f32 %v4329_v63, %v3462_v18 }
 0x153   : > { %2448 = vst.msk [vmem:[%s4005_s14 + $0x1dc] sm:$0xf] %vm2328_vm3, %v3322_v14  ;;  %v3320_v24 = vpack.c.bf16 %v1809_v15, %v1809_v15  ;;  %v1814_v25 = vmax.f32 %v1687_v16, 0.0  ;;  %v1685_v26 = vadd.f32 %v4337_v3, %v1551_v17  ;;  %v1554_v27 = vmul.f32 %v4329_v63, %v3526_v23  ;;  %v1141_v28 = vpop.f32.mrf.mxu0  ;;  %v1397_v33 = vpop.f32.mrf.mxu1 }
 0x154   : > { %2382 = vst.msk [vmem:[%s4005_s14 + $0xd4] sm:$0xf] %vm2328_vm3, %v3256_v19  ;;  %v3261_v29 = vpack.c.bf16 %v1750_v20, %v1750_v20  ;;  %v1748_v30 = vmax.f32 %v1621_v21, 0.0  ;;  %v1624_v31 = vadd.f32 %v4337_v3, %v1490_v22  ;;  %v1488_v32 = vmul.f32 %v4329_v63, %v1141_v28 }
 0x155   : > { %2446 = vst.msk [vmem:[%s4005_s14 + $0x1d4] sm:$0xf] %vm2328_vm3, %v3320_v24  ;;  %v3325_v34 = vpack.c.bf16 %v1814_v25, %v1814_v25  ;;  %v1812_v35 = vmax.f32 %v1685_v26, 0.0  ;;  %v1688_v36 = vadd.f32 %v4337_v3, %v1554_v27  ;;  %v1552_v37 = vmul.f32 %v4329_v63, %v1397_v33  ;;  %v3465_v38 = vpop.f32.mrf.mxu0  ;;  %v3529_v43 = vpop.f32.mrf.mxu1 }
 0x156   : > { %2387 = vst.msk [vmem:[%s4005_s14 + $0xe8] sm:$0xf] %vm2328_vm3, %v3261_v29  ;;  %v3259_v39 = vpack.c.bf16 %v1748_v30, %v1748_v30  ;;  %v1751_v40 = vmax.f32 %v1624_v31, 0.0  ;;  %v1622_v41 = vadd.f32 %v4337_v3, %v1488_v32  ;;  %v1493_v42 = vmul.f32 %v4329_v63, %v3465_v38 }
 0x157   : > { %2451 = vst.msk [vmem:[%s4005_s14 + $0x1e8] sm:$0xf] %vm2328_vm3, %v3325_v34  ;;  %v3323_v44 = vpack.c.bf16 %v1812_v35, %v1812_v35  ;;  %v1815_v45 = vmax.f32 %v1688_v36, 0.0  ;;  %v1686_v46 = vadd.f32 %v4337_v3, %v1552_v37  ;;  %v1557_v47 = vmul.f32 %v4329_v63, %v3529_v43  ;;  %v1154_v48 = vpop.f32.mrf.mxu0  ;;  %v1410_v53 = vpop.f32.mrf.mxu1 }
 0x158   : > { %2385 = vst.msk [vmem:[%s4005_s14 + $0xe0] sm:$0xf] %vm2328_vm3, %v3259_v39  ;;  %v3262_v49 = vpack.c.bf16 %v1751_v40, %v1751_v40  ;;  %v1749_v50 = vmax.f32 %v1622_v41, 0.0  ;;  %v1627_v51 = vadd.f32 %v4337_v3, %v1493_v42  ;;  %v1491_v52 = vmul.f32 %v4329_v63, %v1154_v48 }
 0x159   : > { %2449 = vst.msk [vmem:[%s4005_s14 + $0x1e0] sm:$0xf] %vm2328_vm3, %v3323_v44  ;;  %v3326_v54 = vpack.c.bf16 %v1815_v45, %v1815_v45  ;;  %v1813_v55 = vmax.f32 %v1686_v46, 0.0  ;;  %v1691_v56 = vadd.f32 %v4337_v3, %v1557_v47  ;;  %v1555_v57 = vmul.f32 %v4329_v63, %v1410_v53  ;;  %v3466_v58 = vpop.f32.mrf.mxu0  ;;  %v3530_v0 = vpop.f32.mrf.mxu1 }
 0x15a   : > { %2388 = vst.msk [vmem:[%s4005_s14 + $0xec] sm:$0xf] %vm2328_vm3, %v3262_v49  ;;  %v3260_v59 = vpack.c.bf16 %v1749_v50, %v1749_v50  ;;  %v1754_v60 = vmax.f32 %v1627_v51, 0.0  ;;  %v1625_v61 = vadd.f32 %v4337_v3, %v1491_v52  ;;  %v1494_v62 = vmul.f32 %v4329_v63, %v3466_v58 }
 0x15b   : > { %2452 = vst.msk [vmem:[%s4005_s14 + $0x1ec] sm:$0xf] %vm2328_vm3, %v3326_v54  ;;  %v3324_v1 = vpack.c.bf16 %v1813_v55, %v1813_v55  ;;  %v1818_v6 = vmax.f32 %v1691_v56, 0.0  ;;  %v1689_v2 = vadd.f32 %v4337_v3, %v1555_v57  ;;  %v1157_v8 = vpop.f32.mrf.mxu0  ;;  %v1413_v10 = vpop.f32.mrf.mxu1 }
 0x15c   : > { %2386 = vst.msk [vmem:[%s4005_s14 + $0xe4] sm:$0xf] %vm2328_vm3, %v3260_v59  ;;  %v3265_v4 = vpack.c.bf16 %v1754_v60, %v1754_v60  ;;  %v1752_v5 = vmax.f32 %v1625_v61, 0.0  ;;  %v1628_v7 = vadd.f32 %v4337_v3, %v1494_v62  ;;  %v1492_v9 = vmul.f32 %v4329_v63, %v1157_v8 }
 0x15d   : > { %2450 = vst.msk [vmem:[%s4005_s14 + $0x1e4] sm:$0xf] %vm2328_vm3, %v3324_v1  ;;  %v3329_v11 = vpack.c.bf16 %v1818_v6, %v1818_v6  ;;  %v1816_v12 = vmax.f32 %v1689_v2, 0.0  ;;  %v1556_v13 = vmul.f32 %v4329_v63, %v1413_v10 }
 0x15e   : > { %2391 = vst.msk [vmem:[%s4005_s14 + $0xf8] sm:$0xf] %vm2328_vm3, %v3265_v4  ;;  %v3263_v14 = vpack.c.bf16 %v1752_v5, %v1752_v5  ;;  %v1755_v15 = vmax.f32 %v1628_v7, 0.0  ;;  %v1626_v16 = vadd.f32 %v4337_v3, %v1492_v9 }
 0x15f   : > { %2455 = vst.msk [vmem:[%s4005_s14 + $0x1f8] sm:$0xf] %vm2328_vm3, %v3329_v11  ;;  %v3327_v17 = vpack.c.bf16 %v1816_v12, %v1816_v12  ;;  %v1690_v18 = vadd.f32 %v4337_v3, %v1556_v13 }
 0x160   : > { %2389 = vst.msk [vmem:[%s4005_s14 + $0xf0] sm:$0xf] %vm2328_vm3, %v3263_v14  ;;  %v3266_v19 = vpack.c.bf16 %v1755_v15, %v1755_v15  ;;  %v1753_v20 = vmax.f32 %v1626_v16, 0.0 }
 0x161   : > { %2453 = vst.msk [vmem:[%s4005_s14 + $0x1f0] sm:$0xf] %vm2328_vm3, %v3327_v17  ;;  %v1817_v63 = vmax.f32 %v1690_v18, 0.0  ;;  %2462 = sbr.rel (!%p3832_p4) target bundleno = 439 (0x1b7), region = 40 }
 0x162   : > { %2392 = vst.msk [vmem:[%s4005_s14 + $0xfc] sm:$0xf] %vm2328_vm3, %v3266_v19  ;;  %v3264_v21 = vpack.c.bf16 %v1753_v20, %v1753_v20 }
 0x163   : > { %v3328_v22 = vpack.c.bf16 %v1817_v63, %v1817_v63 }
 0x164   : > { %2390 = vst.msk [vmem:[%s4005_s14 + $0xf4] sm:$0xf] %vm2328_vm3, %v3264_v21 }
 0x165   : > { %2454 = vst.msk [vmem:[%s4005_s14 + $0x1f4] sm:$0xf] %vm2328_vm3, %v3328_v22 }
 0x166   : > { %s4723_s24 = smov (!%p2465_p8, %s2464_s24), 127 }
 0x167   : > { %s3188_s30 = sshll.u32 %s4723_s24, 6 }
 0x168   : > { %p3191_p9 = scmp.eq.s32.totalorder %s3188_s30, 0 }
 0x169   : > { %s4524_s5 = sshrl.u32 (!%p3191_p9), %s4723_s24, 6 }
 0x16a   : > { %2473 = sbr.rel (%p3191_p9) target bundleno = 439 (0x1b7), region = 44  ;;  %p3192_p10 = scmp.le.s32.totalorder (!%p3191_p9), %s4524_s5, 0 }
 0x16f   : > { %2880 = sbr.rel (%p3192_p10) target bundleno = 422 (0x1a6), region = 116  ;;  %s4716_s18 = smov (!%p3192_p10), %s4518_s29 }
 0x170   : > { %s4717_s23 = smov (!%p3192_p10), %s4005_s14  ;;  %s4533_s26 = smov (!%p3192_p10), 0  }
 0x171   : > { %s4535_s6 = smov (!%p3192_p10), 0  }
 0x174 LB: >> { %v2490_v3 = vld [vmem:[%s3755_s23] sm:$0xf]  ;;  %v2492_v23 = vld [vmem:[%s3755_s23 + $0x4] sm:$0xf]  ;;  %v2494_v24 = vld [vmem:[%s3755_s23 + $0x8] sm:$0xf]  ;;  %s3763_s6 = sphi %s4535_s6, %s2484_s6   ;;  %s3759_s26 = sphi %s4533_s26, %s4718_s26   ;;  %s3755_s23 = sphi %s4717_s23, %s2623_s23   ;;  %s3751_s18 = sphi %s4716_s18, %s2624_s18  }
 0x175   : >> { %2491 = vst [vmem:[%s3751_s18] sm:$0xf] %v2490_v3  ;;  %2493 = vst [vmem:[%s3751_s18 + $0x4] sm:$0xf] %v2492_v23  ;;  %v2496_v25 = vld [vmem:[%s3755_s23 + $0xc] sm:$0xf]  ;;  %s2618_s7 = sadd.s32 1, %s3759_s26 }
 0x176   : >> { %2495 = vst [vmem:[%s3751_s18 + $0x8] sm:$0xf] %v2494_v24  ;;  %v2498_v26 = vld [vmem:[%s3755_s23 + $0x10] sm:$0xf]  ;;  %v2500_v27 = vld [vmem:[%s3755_s23 + $0x14] sm:$0xf]  ;;  %p2619_p11 = scmp.ge.s32.totalorder %s2618_s7, %s4524_s5 }
 0x177   : >> { %2497 = vst [vmem:[%s3751_s18 + $0xc] sm:$0xf] %v2496_v25  ;;  %2499 = vst [vmem:[%s3751_s18 + $0x10] sm:$0xf] %v2498_v26  ;;  %v2502_v28 = vld [vmem:[%s3755_s23 + $0x18] sm:$0xf] }
 0x178   : >> { %2501 = vst [vmem:[%s3751_s18 + $0x14] sm:$0xf] %v2500_v27  ;;  %v2504_v29 = vld [vmem:[%s3755_s23 + $0x1c] sm:$0xf]  ;;  %v2506_v30 = vld [vmem:[%s3755_s23 + $0x20] sm:$0xf] }
 0x179   : >> { %2503 = vst [vmem:[%s3751_s18 + $0x18] sm:$0xf] %v2502_v28  ;;  %2505 = vst [vmem:[%s3751_s18 + $0x1c] sm:$0xf] %v2504_v29  ;;  %v2508_v31 = vld [vmem:[%s3755_s23 + $0x24] sm:$0xf] }
 0x17a   : >> { %2507 = vst [vmem:[%s3751_s18 + $0x20] sm:$0xf] %v2506_v30  ;;  %v2510_v32 = vld [vmem:[%s3755_s23 + $0x28] sm:$0xf]  ;;  %v2512_v33 = vld [vmem:[%s3755_s23 + $0x2c] sm:$0xf] }
 0x17b   : >> { %2509 = vst [vmem:[%s3751_s18 + $0x24] sm:$0xf] %v2508_v31  ;;  %2511 = vst [vmem:[%s3751_s18 + $0x28] sm:$0xf] %v2510_v32  ;;  %v2514_v34 = vld [vmem:[%s3755_s23 + $0x30] sm:$0xf] }
 0x17c   : >> { %2513 = vst [vmem:[%s3751_s18 + $0x2c] sm:$0xf] %v2512_v33  ;;  %v2516_v35 = vld [vmem:[%s3755_s23 + $0x34] sm:$0xf]  ;;  %v2518_v36 = vld [vmem:[%s3755_s23 + $0x38] sm:$0xf] }
 0x17d   : >> { %2515 = vst [vmem:[%s3751_s18 + $0x30] sm:$0xf] %v2514_v34  ;;  %2517 = vst [vmem:[%s3751_s18 + $0x34] sm:$0xf] %v2516_v35  ;;  %v2520_v37 = vld [vmem:[%s3755_s23 + $0x3c] sm:$0xf] }
 0x17e   : >> { %2519 = vst [vmem:[%s3751_s18 + $0x38] sm:$0xf] %v2518_v36  ;;  %v2522_v38 = vld [vmem:[%s3755_s23 + $0x40] sm:$0xf]  ;;  %v2524_v39 = vld [vmem:[%s3755_s23 + $0x44] sm:$0xf] }
 0x17f   : >> { %2521 = vst [vmem:[%s3751_s18 + $0x3c] sm:$0xf] %v2520_v37  ;;  %2523 = vst [vmem:[%s3751_s18 + $0x40] sm:$0xf] %v2522_v38  ;;  %v2526_v40 = vld [vmem:[%s3755_s23 + $0x48] sm:$0xf] }
 0x180   : >> { %2525 = vst [vmem:[%s3751_s18 + $0x44] sm:$0xf] %v2524_v39  ;;  %v2528_v41 = vld [vmem:[%s3755_s23 + $0x4c] sm:$0xf]  ;;  %v2530_v42 = vld [vmem:[%s3755_s23 + $0x50] sm:$0xf] }
 0x181   : >> { %2527 = vst [vmem:[%s3751_s18 + $0x48] sm:$0xf] %v2526_v40  ;;  %2529 = vst [vmem:[%s3751_s18 + $0x4c] sm:$0xf] %v2528_v41  ;;  %v2532_v43 = vld [vmem:[%s3755_s23 + $0x54] sm:$0xf] }
 0x182   : >> { %2531 = vst [vmem:[%s3751_s18 + $0x50] sm:$0xf] %v2530_v42  ;;  %v2534_v44 = vld [vmem:[%s3755_s23 + $0x58] sm:$0xf]  ;;  %v2536_v45 = vld [vmem:[%s3755_s23 + $0x5c] sm:$0xf] }
 0x183   : >> { %2533 = vst [vmem:[%s3751_s18 + $0x54] sm:$0xf] %v2532_v43  ;;  %2535 = vst [vmem:[%s3751_s18 + $0x58] sm:$0xf] %v2534_v44  ;;  %v2538_v46 = vld [vmem:[%s3755_s23 + $0x60] sm:$0xf] }
 0x184   : >> { %2537 = vst [vmem:[%s3751_s18 + $0x5c] sm:$0xf] %v2536_v45  ;;  %v2540_v47 = vld [vmem:[%s3755_s23 + $0x64] sm:$0xf]  ;;  %v2542_v48 = vld [vmem:[%s3755_s23 + $0x68] sm:$0xf] }
 0x185   : >> { %2539 = vst [vmem:[%s3751_s18 + $0x60] sm:$0xf] %v2538_v46  ;;  %2541 = vst [vmem:[%s3751_s18 + $0x64] sm:$0xf] %v2540_v47  ;;  %v2544_v49 = vld [vmem:[%s3755_s23 + $0x6c] sm:$0xf] }
 0x186   : >> { %2543 = vst [vmem:[%s3751_s18 + $0x68] sm:$0xf] %v2542_v48  ;;  %v2546_v50 = vld [vmem:[%s3755_s23 + $0x70] sm:$0xf]  ;;  %v2548_v51 = vld [vmem:[%s3755_s23 + $0x74] sm:$0xf] }
 0x187   : >> { %2545 = vst [vmem:[%s3751_s18 + $0x6c] sm:$0xf] %v2544_v49  ;;  %2547 = vst [vmem:[%s3751_s18 + $0x70] sm:$0xf] %v2546_v50  ;;  %v2550_v52 = vld [vmem:[%s3755_s23 + $0x78] sm:$0xf] }
 0x188   : >> { %2549 = vst [vmem:[%s3751_s18 + $0x74] sm:$0xf] %v2548_v51  ;;  %v2552_v53 = vld [vmem:[%s3755_s23 + $0x7c] sm:$0xf]  ;;  %v2554_v54 = vld [vmem:[%s3755_s23 + $0x80] sm:$0xf] }
 0x189   : >> { %2551 = vst [vmem:[%s3751_s18 + $0x78] sm:$0xf] %v2550_v52  ;;  %2553 = vst [vmem:[%s3751_s18 + $0x7c] sm:$0xf] %v2552_v53  ;;  %v2556_v55 = vld [vmem:[%s3755_s23 + $0x84] sm:$0xf] }
 0x18a   : >> { %2555 = vst [vmem:[%s3751_s18 + $0x80] sm:$0xf] %v2554_v54  ;;  %v2558_v56 = vld [vmem:[%s3755_s23 + $0x88] sm:$0xf]  ;;  %v2560_v57 = vld [vmem:[%s3755_s23 + $0x8c] sm:$0xf] }
 0x18b   : >> { %2557 = vst [vmem:[%s3751_s18 + $0x84] sm:$0xf] %v2556_v55  ;;  %2559 = vst [vmem:[%s3751_s18 + $0x88] sm:$0xf] %v2558_v56  ;;  %v2562_v58 = vld [vmem:[%s3755_s23 + $0x90] sm:$0xf] }
 0x18c   : >> { %2561 = vst [vmem:[%s3751_s18 + $0x8c] sm:$0xf] %v2560_v57  ;;  %v2564_v59 = vld [vmem:[%s3755_s23 + $0x94] sm:$0xf]  ;;  %v2566_v60 = vld [vmem:[%s3755_s23 + $0x98] sm:$0xf] }
 0x18d   : >> { %2563 = vst [vmem:[%s3751_s18 + $0x90] sm:$0xf] %v2562_v58  ;;  %2565 = vst [vmem:[%s3751_s18 + $0x94] sm:$0xf] %v2564_v59  ;;  %v2568_v61 = vld [vmem:[%s3755_s23 + $0x9c] sm:$0xf] }
 0x18e   : >> { %2567 = vst [vmem:[%s3751_s18 + $0x98] sm:$0xf] %v2566_v60  ;;  %v2570_v62 = vld [vmem:[%s3755_s23 + $0xa0] sm:$0xf]  ;;  %v2572_v0 = vld [vmem:[%s3755_s23 + $0xa4] sm:$0xf] }
 0x18f   : >> { %2569 = vst [vmem:[%s3751_s18 + $0x9c] sm:$0xf] %v2568_v61  ;;  %2571 = vst [vmem:[%s3751_s18 + $0xa0] sm:$0xf] %v2570_v62  ;;  %v2574_v1 = vld [vmem:[%s3755_s23 + $0xa8] sm:$0xf] }
 0x190   : >> { %2573 = vst [vmem:[%s3751_s18 + $0xa4] sm:$0xf] %v2572_v0  ;;  %v2576_v6 = vld [vmem:[%s3755_s23 + $0xac] sm:$0xf]  ;;  %v2578_v2 = vld [vmem:[%s3755_s23 + $0xb0] sm:$0xf] }
 0x191   : >> { %2575 = vst [vmem:[%s3751_s18 + $0xa8] sm:$0xf] %v2574_v1  ;;  %2577 = vst [vmem:[%s3751_s18 + $0xac] sm:$0xf] %v2576_v6  ;;  %v2580_v8 = vld [vmem:[%s3755_s23 + $0xb4] sm:$0xf] }
 0x192   : >> { %2579 = vst [vmem:[%s3751_s18 + $0xb0] sm:$0xf] %v2578_v2  ;;  %v2582_v4 = vld [vmem:[%s3755_s23 + $0xb8] sm:$0xf]  ;;  %v2584_v5 = vld [vmem:[%s3755_s23 + $0xbc] sm:$0xf] }
 0x193   : >> { %2581 = vst [vmem:[%s3751_s18 + $0xb4] sm:$0xf] %v2580_v8  ;;  %2583 = vst [vmem:[%s3751_s18 + $0xb8] sm:$0xf] %v2582_v4  ;;  %v2586_v7 = vld [vmem:[%s3755_s23 + $0xc0] sm:$0xf] }
 0x194   : >> { %2585 = vst [vmem:[%s3751_s18 + $0xbc] sm:$0xf] %v2584_v5  ;;  %v2588_v9 = vld [vmem:[%s3755_s23 + $0xc4] sm:$0xf]  ;;  %v2590_v10 = vld [vmem:[%s3755_s23 + $0xc8] sm:$0xf] }
 0x195   : >> { %2587 = vst [vmem:[%s3751_s18 + $0xc0] sm:$0xf] %v2586_v7  ;;  %2589 = vst [vmem:[%s3751_s18 + $0xc4] sm:$0xf] %v2588_v9  ;;  %v2592_v11 = vld [vmem:[%s3755_s23 + $0xcc] sm:$0xf] }
 0x196   : >> { %2591 = vst [vmem:[%s3751_s18 + $0xc8] sm:$0xf] %v2590_v10  ;;  %v2594_v12 = vld [vmem:[%s3755_s23 + $0xd0] sm:$0xf]  ;;  %v2596_v13 = vld [vmem:[%s3755_s23 + $0xd4] sm:$0xf] }
 0x197   : >> { %2593 = vst [vmem:[%s3751_s18 + $0xcc] sm:$0xf] %v2592_v11  ;;  %2595 = vst [vmem:[%s3751_s18 + $0xd0] sm:$0xf] %v2594_v12  ;;  %v2598_v14 = vld [vmem:[%s3755_s23 + $0xd8] sm:$0xf] }
 0x198   : >> { %2597 = vst [vmem:[%s3751_s18 + $0xd4] sm:$0xf] %v2596_v13  ;;  %v2600_v15 = vld [vmem:[%s3755_s23 + $0xdc] sm:$0xf]  ;;  %v2602_v16 = vld [vmem:[%s3755_s23 + $0xe0] sm:$0xf] }
 0x199   : >> { %2599 = vst [vmem:[%s3751_s18 + $0xd8] sm:$0xf] %v2598_v14  ;;  %2601 = vst [vmem:[%s3751_s18 + $0xdc] sm:$0xf] %v2600_v15  ;;  %v2604_v17 = vld [vmem:[%s3755_s23 + $0xe4] sm:$0xf] }
 0x19a   : >> { %2603 = vst [vmem:[%s3751_s18 + $0xe0] sm:$0xf] %v2602_v16  ;;  %v2606_v18 = vld [vmem:[%s3755_s23 + $0xe8] sm:$0xf]  ;;  %v2608_v19 = vld [vmem:[%s3755_s23 + $0xec] sm:$0xf] }
 0x19b   : >> { %2605 = vst [vmem:[%s3751_s18 + $0xe4] sm:$0xf] %v2604_v17  ;;  %2607 = vst [vmem:[%s3751_s18 + $0xe8] sm:$0xf] %v2606_v18  ;;  %v2610_v20 = vld [vmem:[%s3755_s23 + $0xf0] sm:$0xf] }
 0x19c   : >> { %2609 = vst [vmem:[%s3751_s18 + $0xec] sm:$0xf] %v2608_v19  ;;  %v2612_v63 = vld [vmem:[%s3755_s23 + $0xf4] sm:$0xf]  ;;  %v2614_v21 = vld [vmem:[%s3755_s23 + $0xf8] sm:$0xf] }
 0x19d   : >> { %2611 = vst [vmem:[%s3751_s18 + $0xf0] sm:$0xf] %v2610_v20  ;;  %2613 = vst [vmem:[%s3751_s18 + $0xf4] sm:$0xf] %v2612_v63  ;;  %v2616_v22 = vld [vmem:[%s3755_s23 + $0xfc] sm:$0xf] }
 0x19e   : >> { %2615 = vst [vmem:[%s3751_s18 + $0xf8] sm:$0xf] %v2614_v21  ;;  %2617 = vst [vmem:[%s3751_s18 + $0xfc] sm:$0xf] %v2616_v22  ;;  %s4725_s7 = smov (%p2619_p11, %s2618_s7), 0  ;;  %s2484_s6 = sadd.s32 1, %s3763_s6  }
 0x19f   : >> { %s3193_s8 = sshll.u32 %s4725_s7, 8  ;;  %p2483_p12 = scmp.ge.s32.totalorder %s2484_s6, %s4524_s5 }
 0x1a0   : >> { %s2623_s23 = scalar_lea.vmem %s4005_s14, %s3193_s8 [#allocation2]   ;;  %s2624_s18 = scalar_lea.vmem %s4518_s29, %s3193_s8  }
 0x1a1   : >> { %s4718_s26 = smov %s4725_s7  ;;  %2486 = sbr.rel (!%p2483_p12) target bundleno = 372 (0x174), region = 122 }
 0x1a6 PF: > { %s4692_s9 = sand.u32 63, %s4723_s24   ;;  %s3331_s10 = sshll.u32 %s4524_s5, 8 }
 0x1a7   : > { %s2629_s11 = scalar_lea.vmem %s4005_s14, %s3331_s10 [#allocation2]   ;;  %s2631_s12 = scalar_lea.vmem %s4518_s29, %s3331_s10  }
 0x1a8   : > { %p3198_p13 = scmp.le.s32.totalorder %s4692_s9, 0 }
 0x1a9   : > { %s3765_s13 = smov (!%p3198_p13), %s2631_s12   ;;  %s3769_s15 = smov (!%p3198_p13), %s2629_s11  }
 0x1aa   : > { %2894 = sbr.rel (%p3198_p13) target bundleno = 439 (0x1b7), region = 127  ;;  %s3773_s17 = smov (!%p3198_p13), 0  }
 0x1ab   : > { %s3777_s20 = smov (!%p3198_p13), 0  }
 0x1af LB: >> { %v2641_v3 = vld [vmem:[%s3771_s15] sm:$0xf]  ;;  %s2643_s21 = sadd.s32 1, %s3775_s17  ;;  %s2635_s20 = sadd.s32 1, %s3779_s20   ;;  %s3779_s20 = sphi %s3777_s20, %s2635_s20   ;;  %s3775_s17 = sphi %s3773_s17, %s3774_s17   ;;  %s3771_s15 = sphi %s3769_s15, %s2648_s15   ;;  %s3767_s13 = sphi %s3765_s13, %s2649_s13  }
 0x1b0   : >> { %2642 = vst [vmem:[%s3767_s13] sm:$0xf] %v2641_v3  ;;  %p2644_p0 = scmp.ge.s32.totalorder %s2643_s21, %s4692_s9  ;;  %p2634_p1 = scmp.ge.s32.totalorder %s2635_s20, %s4692_s9 }
 0x1b2   : >> { %s4727_s21 = smov (%p2644_p0, %s2643_s21), 0  ;;  %2637 = sbr.rel (!%p2634_p1) target bundleno = 431 (0x1af), region = 133 }
 0x1b3   : >> { %s3199_s14 = sshll.u32 %s4727_s21, 2  ;;  %s3774_s17 = smov %s4727_s21  }
 0x1b4   : >> { %s2648_s15 = scalar_lea.vmem %s2629_s11, %s3199_s14 [#allocation2]   ;;  %s2649_s13 = scalar_lea.vmem %s2631_s12, %s3199_s14  }
 0x1b7 PF: > { %p11_p2 = scmp.ge.s32.totalorder %s3822_s19, 24   ;;  %s4719_s15 = smov %s3743_s16 }
 0x1b8   : > { %s4720_s16 = smov %s3830_s22  ;;  %s4721_s17 = smov %s3822_s19 }
 0x1b9   :  { %13 = sbr.rel (!%p11_p2) target bundleno = 2 (0x2), region = 144 }

</bundles_post_ra>
